<compile_context>
chip_gen: v7x
topology: tpu7x:2x2x1
jax: 0.10.0
libtpu: 0.0.40
codegen_flags: <defaults>
</compile_context>

<pallas_src>
import functools

import jax
import jax.numpy as jnp
import numpy as np
from jax.experimental import pallas as pl
from jax.experimental.pallas import tpu as pltpu


# ----------------------------------------------------------------------------
# Kernel
# ----------------------------------------------------------------------------
def _inception_kernel(H, W, cout, c5, c3a, c3b,
                      x_ref, wstack_ref, bstack_ref,
                      w5b_ref, b5b_ref, w3b_ref, b3b_ref, w3c_ref, b3c_ref,
                      bp_ref, mask_ref,
                      out_ref,
                      patch5, patch3a, patch3b):
    HW = H * W

    def mask(dh, dw):
        # (1, HW) f32 boundary mask for spatial offset (dh, dw), dh/dw in [-2,2].
        i = (dh + 2) * 5 + (dw + 2)
        return mask_ref[i:i + 1, :]

    def shifted(v, dh, dw):
        """v: (C, HW) f32 -> v translated by (dh, dw) with zero boundary.

        out[c, h*W+w] = v[c, (h+dh)*W + (w+dw)] if in-bounds else 0.
        Lane rotation lands on the XLU slot; boundary handled by the mask.
        """
        if dh == 0 and dw == 0:
            return v
        d = dh * W + dw
        return pltpu.roll(v, (-d) % HW, axis=1) * mask(dh, dw)

    def fill_patch(patch_ref, v, k, c):
        """Write the k*k im2col taps of v (c rows) into patch_ref (k*k*c, HW) bf16.

        Row order (kh*k + kw)*c + cin matches the wrapper's weight flattening.
        Every row is overwritten each step -> no zeroing needed, ever.
        """
        pad = k // 2
        for kh in range(k):
            for kw in range(k):
                t = kh * k + kw
                patch_ref[t * c:(t + 1) * c, :] = (
                    shifted(v, kh - pad, kw - pad).astype(jnp.bfloat16))

    def mm(w_ref, patch_ref, b_ref):
        # (Cout, K) bf16 @ (K, HW) bf16 -> (Cout, HW) f32 accumulation.
        return jnp.dot(w_ref[...], patch_ref[...],
                       preferred_element_type=jnp.float32) + b_ref[...]

    x = x_ref[0]                                             # (Cin, HW) bf16

    # ---- all four 1x1 convolutions fused into one MXU matmul ---------------
    y = jnp.dot(wstack_ref[...], x, preferred_element_type=jnp.float32)
    y = y + bstack_ref[...]                                  # (cout+c5+c3a+cout, HW)

    o1, o2, o3 = cout, cout + c5, cout + c5 + c3a
    acc = y[0:o1]                                            # branch1 (0.25 folded)

    # ---- branch5: 1x1 -> 5x5 conv (single im2col matmul, scale folded) -----
    fill_patch(patch5, y[o1:o2], 5, c5)
    acc = acc + mm(w5b_ref, patch5, b5b_ref)

    # ---- branch3: 1x1 -> 3x3 -> 3x3 -----------------------------------------
    fill_patch(patch3a, y[o2:o3], 3, c3a)
    t3b = mm(w3b_ref, patch3a, b3b_ref)                      # (c3b, HW) f32
    fill_patch(patch3b, t3b, 3, c3b)
    acc = acc + mm(w3c_ref, patch3b, b3c_ref)

    # ---- branch_pool: separable 3x3 sum of (wp*0.25/9 . x), then bias -------
    yp = y[o3:]                                              # pre-scaled, no bias
    rows = yp + shifted(yp, -1, 0) + shifted(yp, 1, 0)       # sum over dh
    pooled = rows + shifted(rows, 0, -1) + shifted(rows, 0, 1)  # sum over dw
    acc = acc + pooled + bp_ref[...]

    out_ref[0] = acc.astype(out_ref.dtype)


# ----------------------------------------------------------------------------
# Wrapper
# ----------------------------------------------------------------------------
def _flat_w(w):
    """(kH, kW, Cin, Cout) -> (Cout, kH*kW*Cin); column = (kh*k+kw)*Cin + cin."""
    k, _, cin, cout = w.shape
    return jnp.transpose(w, (3, 0, 1, 2)).reshape(cout, k * k * cin)


def _boundary_masks(H, W):
    """(25, H*W) f32; row (dh+2)*5+(dw+2) is 1 where (h+dh, w+dw) is in-bounds."""
    hh = np.arange(H)[:, None]
    ww = np.arange(W)[None, :]
    ms = []
    for dh in range(-2, 3):
        for dw in range(-2, 3):
            m = ((hh + dh >= 0) & (hh + dh < H) &
                 (ww + dw >= 0) & (ww + dw < W))
            ms.append(m.reshape(H * W))
    return jnp.asarray(np.stack(ms, 0).astype(np.float32))


@jax.jit
def inception_forward(x_nchw, params):
    """x_nchw: (N, Cin, H, W) float32.  Returns (N, Cout, H, W) float32."""
    (w1, b1, w5a, b5a, w5b, b5b,
     w3a, b3a, w3b, b3b, w3c, b3c, wp, bp) = params
    N, Cin, H, W = x_nchw.shape
    HW = H * W
    cout = w1.shape[-1]
    c5, c3a, c3b = w5a.shape[-1], w3a.shape[-1], w3b.shape[-1]

    # Stacked 1x1 weights/biases; branch-mean 0.25 and avg-pool 1/9 are folded
    # in at trace time.  Pool rows carry no bias (bp is added after pooling so
    # the border behaviour matches conv1x1(avg_pool(x)) exactly).
    wstack = jnp.concatenate(
        [_flat_w(w1) * 0.25, _flat_w(w5a), _flat_w(w3a),
         _flat_w(wp) * (0.25 / 9.0)], axis=0).astype(jnp.bfloat16)
    bstack = jnp.concatenate(
        [b1.reshape(-1, 1) * 0.25, b5a.reshape(-1, 1), b3a.reshape(-1, 1),
         jnp.zeros((cout, 1), jnp.float32)], axis=0).astype(jnp.float32)

    w5bf = (_flat_w(w5b) * 0.25).astype(jnp.bfloat16)
    b5bf = (b5b.reshape(-1, 1) * 0.25).astype(jnp.float32)
    w3bf = _flat_w(w3b).astype(jnp.bfloat16)
    b3bf = b3b.reshape(-1, 1).astype(jnp.float32)
    w3cf = (_flat_w(w3c) * 0.25).astype(jnp.bfloat16)
    b3cf = (b3c.reshape(-1, 1) * 0.25).astype(jnp.float32)
    bpf = (bp.reshape(-1, 1) * 0.25).astype(jnp.float32)

    masks = _boundary_masks(H, W)                    # (25, HW) f32, DMA'd once

    x_flat = x_nchw.reshape(N, Cin, HW).astype(jnp.bfloat16)

    consts = [wstack, bstack, w5bf, b5bf, w3bf, b3bf, w3cf, b3cf, bpf, masks]

    def const_spec(a):
        return pl.BlockSpec(a.shape, lambda n: (0,) * a.ndim)

    kernel = functools.partial(_inception_kernel, H, W, cout, c5, c3a, c3b)

    out = pl.pallas_call(
        kernel,
        out_shape=jax.ShapeDtypeStruct((N, cout, HW), jnp.float32),
        grid_spec=pltpu.PrefetchScalarGridSpec(
            num_scalar_prefetch=0,
            grid=(N,),
            in_specs=[pl.BlockSpec((1, Cin, HW), lambda n: (n, 0, 0))]
                     + [const_spec(a) for a in consts],
            out_specs=pl.BlockSpec((1, cout, HW), lambda n: (n, 0, 0)),
            scratch_shapes=[
                pltpu.VMEM((25 * c5, HW), jnp.bfloat16),   # 5x5 im2col patches
                pltpu.VMEM((9 * c3a, HW), jnp.bfloat16),   # first 3x3 patches
                pltpu.VMEM((9 * c3b, HW), jnp.bfloat16),   # second 3x3 patches
            ],
        ),
        compiler_params=pltpu.CompilerParams(
            dimension_semantics=("parallel",)),
    )(x_flat, *consts)

    return out.reshape(N, cout, H, W)


# ----------------------------------------------------------------------------
# Params / reference / test
# ----------------------------------------------------------------------------
def make_params(key, in_channels, out_channels, hidden=(4, 4, 4)):
    """Deterministic synthetic params.  Conv weights stored as (kH, kW, Cin, Cout)."""
    def conv_p(key, k, cin, cout):
        kw_, kb_ = jax.random.split(key)
        scale = 1.0 / jnp.sqrt(cin * k * k)
        w = jax.random.uniform(kw_, (k, k, cin, cout), jnp.float32, -scale, scale)
        b = jax.random.uniform(kb_, (1, cout), jnp.float32, -scale, scale)
        return w, b

    keys = jax.random.split(key, 7)
    w1, b1 = conv_p(keys[0], 1, in_channels, out_channels)
    w5a, b5a = conv_p(keys[1], 1, in_channels, hidden[0])
    w5b, b5b = conv_p(keys[2], 5, hidden[0], out_channels)
    w3a, b3a = conv_p(keys[3], 1, in_channels, hidden[1])
    w3b, b3b = conv_p(keys[4], 3, hidden[1], hidden[2])
    w3c, b3c = conv_p(keys[5], 3, hidden[2], out_channels)
    wp, bp = conv_p(keys[6], 1, in_channels, out_channels)
    return (w1, b1, w5a, b5a, w5b, b5b,
            w3a, b3a, w3b, b3b, w3c, b3c, wp, bp)


def inception_reference(x_nchw, params):
    """Plain-JAX (f32) reference mirroring the PyTorch module, for validation."""
    (w1, b1, w5a, b5a, w5b, b5b,
     w3a, b3a, w3b, b3b, w3c, b3c, wp, bp) = params
    x = jnp.transpose(x_nchw, (0, 2, 3, 1))

    def conv(x, w, b, pad):
        y = jax.lax.conv_general_dilated(
            x, w, (1, 1), [(pad, pad), (pad, pad)],
            dimension_numbers=('NHWC', 'HWIO', 'NHWC'))
        return y + b.reshape(1, 1, 1, -1)

    br1 = conv(x, w1, b1, 0)
    br5 = conv(conv(x, w5a, b5a, 0), w5b, b5b, 2)
    br3 = conv(conv(conv(x, w3a, b3a, 0), w3b, b3b, 1), w3c, b3c, 1)
    pooled = jax.lax.reduce_window(
        x, 0.0, jax.lax.add, (1, 3, 3, 1), (1, 1, 1, 1),
        [(0, 0), (1, 1), (1, 1), (0, 0)]) / 9.0   # count_include_pad=True
    brp = conv(pooled, wp, bp, 0)
    out = (br1 + br5 + br3 + brp) * 0.25
    return jnp.transpose(out, (0, 3, 1, 2))


if __name__ == "__main__":
    N, Cin, H, W = 2, 4, 16, 16
    Cout = 8
    key = jax.random.PRNGKey(0)
    k_x, k_p = jax.random.split(key)

    x = jax.random.normal(k_x, (N, Cin, H, W), jnp.float32)
    params = make_params(k_p, Cin, Cout, hidden=(4, 4, 4))

    out = inception_forward(x, params)
    out = jax.block_until_ready(out)

    ref = inception_reference(x, params)
    assert out.shape == (N, Cout, H, W)
    err = jnp.max(jnp.abs(out - ref))
    # bf16 matmul operands (f32 accumulation) -> relaxed tolerance vs f32 ref.
    assert jnp.allclose(out, ref, atol=2e-2, rtol=2e-2), f"max abs err {err}"

    print("KERNEL_OK")
</pallas_src>

<mosaic_0001>
module attributes {stable_mosaic.version = 11 : i64} {
  func.func @_inception_kernel(%arg0: i32, %arg1: memref<1x4x256xbf16, #tpu.memory_space<vmem>>, %arg2: memref<24x4xbf16, #tpu.memory_space<vmem>>, %arg3: memref<24x1xf32, #tpu.memory_space<vmem>>, %arg4: memref<8x100xbf16, #tpu.memory_space<vmem>>, %arg5: memref<8x1xf32, #tpu.memory_space<vmem>>, %arg6: memref<4x36xbf16, #tpu.memory_space<vmem>>, %arg7: memref<4x1xf32, #tpu.memory_space<vmem>>, %arg8: memref<8x36xbf16, #tpu.memory_space<vmem>>, %arg9: memref<8x1xf32, #tpu.memory_space<vmem>>, %arg10: memref<8x1xf32, #tpu.memory_space<vmem>>, %arg11: memref<25x256xf32, #tpu.memory_space<vmem>>, %arg12: memref<1x8x256xf32, #tpu.memory_space<vmem>>, %arg13: memref<100x256xbf16, #tpu.memory_space<vmem>>, %arg14: memref<36x256xbf16, #tpu.memory_space<vmem>>, %arg15: memref<36x256xbf16, #tpu.memory_space<vmem>>) attributes {dimension_semantics = [#tpu.dimension_semantics<parallel>], iteration_bounds = array<i64: 2>, scalar_prefetch = 0 : i64, scratch_operands = 3 : i64, tpu.core_type = #tpu.core_type<tc>, window_params = [{transform_indices = @transform_0, window_bounds = array<i64: 1, 4, 256>}, {pipeline_mode = #tpu.pipeline_mode<synchronous>, transform_indices = @transform_1, window_bounds = array<i64: 24, 4>}, {pipeline_mode = #tpu.pipeline_mode<synchronous>, transform_indices = @transform_2, window_bounds = array<i64: 24, 1>}, {pipeline_mode = #tpu.pipeline_mode<synchronous>, transform_indices = @transform_3, window_bounds = array<i64: 8, 100>}, {pipeline_mode = #tpu.pipeline_mode<synchronous>, transform_indices = @transform_4, window_bounds = array<i64: 8, 1>}, {pipeline_mode = #tpu.pipeline_mode<synchronous>, transform_indices = @transform_5, window_bounds = array<i64: 4, 36>}, {pipeline_mode = #tpu.pipeline_mode<synchronous>, transform_indices = @transform_6, window_bounds = array<i64: 4, 1>}, {pipeline_mode = #tpu.pipeline_mode<synchronous>, transform_indices = @transform_7, window_bounds = array<i64: 8, 36>}, {pipeline_mode = #tpu.pipeline_mode<synchronous>, transform_indices = @transform_8, window_bounds = array<i64: 8, 1>}, {pipeline_mode = #tpu.pipeline_mode<synchronous>, transform_indices = @transform_9, window_bounds = array<i64: 8, 1>}, {pipeline_mode = #tpu.pipeline_mode<synchronous>, transform_indices = @transform_10, window_bounds = array<i64: 25, 256>}, {transform_indices = @transform_11, window_bounds = array<i64: 1, 8, 256>}]} {
    %c0 = arith.constant 0 : index
    %c0_0 = arith.constant 0 : index
    %c0_1 = arith.constant 0 : index
    %0 = vector.load %arg1[%c0, %c0_0, %c0_1] : memref<1x4x256xbf16, #tpu.memory_space<vmem>>, vector<1x4x256xbf16>
    %1 = vector.shape_cast %0 : vector<1x4x256xbf16> to vector<4x256xbf16>
    %c0_2 = arith.constant 0 : index
    %c0_3 = arith.constant 0 : index
    %2 = vector.load %arg2[%c0_2, %c0_3] : memref<24x4xbf16, #tpu.memory_space<vmem>>, vector<24x4xbf16>
    %cst = arith.constant dense<0.000000e+00> : vector<24x256xf32>
    %3 = tpu.matmul %2, %1, %cst {dimension_numbers = #tpu.dot_dimension_numbers<[1], [0], [0], [1], [0, 0, 1, 1], [], []>} : vector<24x4xbf16>, vector<4x256xbf16>, vector<24x256xf32> -> vector<24x256xf32>
    %c0_4 = arith.constant 0 : index
    %c0_5 = arith.constant 0 : index
    %4 = vector.load %arg3[%c0_4, %c0_5] : memref<24x1xf32, #tpu.memory_space<vmem>>, vector<24x1xf32>
    %5 = vector.broadcast %4 : vector<24x1xf32> to vector<24x256xf32>
    %6 = arith.addf %3, %5 : vector<24x256xf32>
    %7 = vector.extract_strided_slice %6 {offsets = [0, 0], sizes = [8, 256], strides = [1, 1]} : vector<24x256xf32> to vector<8x256xf32>
    %8 = vector.extract_strided_slice %6 {offsets = [8, 0], sizes = [4, 256], strides = [1, 1]} : vector<24x256xf32> to vector<4x256xf32>
    %c34_i32 = arith.constant 34 : i32
    %9 = tpu.dynamic_rotate %8 by %c34_i32 dim 1 : vector<4x256xf32>, i32 -> vector<4x256xf32>
    %c0_6 = arith.constant 0 : index
    %c0_7 = arith.constant 0 : index
    %10 = vector.load %arg11[%c0_6, %c0_7] : memref<25x256xf32, #tpu.memory_space<vmem>>, vector<1x256xf32>
    %11 = vector.broadcast %10 : vector<1x256xf32> to vector<4x256xf32>
    %12 = arith.mulf %9, %11 : vector<4x256xf32>
    %13 = arith.truncf %12 : vector<4x256xf32> to vector<4x256xbf16>
    %c0_8 = arith.constant 0 : index
    %c0_9 = arith.constant 0 : index
    %14 = vector.load %arg13[%c0_8, %c0_9] : memref<100x256xbf16, #tpu.memory_space<vmem>>, vector<4x256xbf16>
    tpu.vector_store %arg13[%c0_8, %c0_9], %13 {strides = array<i32>} : memref<100x256xbf16, #tpu.memory_space<vmem>>, vector<4x256xbf16>,
    %c33_i32 = arith.constant 33 : i32
    %15 = tpu.dynamic_rotate %8 by %c33_i32 dim 1 : vector<4x256xf32>, i32 -> vector<4x256xf32>
    %c1 = arith.constant 1 : index
    %c0_10 = arith.constant 0 : index
    %16 = vector.load %arg11[%c1, %c0_10] : memref<25x256xf32, #tpu.memory_space<vmem>>, vector<1x256xf32>
    %17 = vector.broadcast %16 : vector<1x256xf32> to vector<4x256xf32>
    %18 = arith.mulf %15, %17 : vector<4x256xf32>
    %19 = arith.truncf %18 : vector<4x256xf32> to vector<4x256xbf16>
    %c4 = arith.constant 4 : index
    %c0_11 = arith.constant 0 : index
    %20 = vector.load %arg13[%c4, %c0_11] : memref<100x256xbf16, #tpu.memory_space<vmem>>, vector<4x256xbf16>
    tpu.vector_store %arg13[%c4, %c0_11], %19 {strides = array<i32>} : memref<100x256xbf16, #tpu.memory_space<vmem>>, vector<4x256xbf16>,
    %c32_i32 = arith.constant 32 : i32
    %21 = tpu.dynamic_rotate %8 by %c32_i32 dim 1 : vector<4x256xf32>, i32 -> vector<4x256xf32>
    %c2 = arith.constant 2 : index
    %c0_12 = arith.constant 0 : index
    %22 = vector.load %arg11[%c2, %c0_12] : memref<25x256xf32, #tpu.memory_space<vmem>>, vector<1x256xf32>
    %23 = vector.broadcast %22 : vector<1x256xf32> to vector<4x256xf32>
    %24 = arith.mulf %21, %23 : vector<4x256xf32>
    %25 = arith.truncf %24 : vector<4x256xf32> to vector<4x256xbf16>
    %c8 = arith.constant 8 : index
    %c0_13 = arith.constant 0 : index
    %26 = vector.load %arg13[%c8, %c0_13] : memref<100x256xbf16, #tpu.memory_space<vmem>>, vector<4x256xbf16>
    tpu.vector_store %arg13[%c8, %c0_13], %25 {strides = array<i32>} : memref<100x256xbf16, #tpu.memory_space<vmem>>, vector<4x256xbf16>,
    %c31_i32 = arith.constant 31 : i32
    %27 = tpu.dynamic_rotate %8 by %c31_i32 dim 1 : vector<4x256xf32>, i32 -> vector<4x256xf32>
    %c3 = arith.constant 3 : index
    %c0_14 = arith.constant 0 : index
    %28 = vector.load %arg11[%c3, %c0_14] : memref<25x256xf32, #tpu.memory_space<vmem>>, vector<1x256xf32>
    %29 = vector.broadcast %28 : vector<1x256xf32> to vector<4x256xf32>
    %30 = arith.mulf %27, %29 : vector<4x256xf32>
    %31 = arith.truncf %30 : vector<4x256xf32> to vector<4x256xbf16>
    %c12 = arith.constant 12 : index
    %c0_15 = arith.constant 0 : index
    %32 = vector.load %arg13[%c12, %c0_15] : memref<100x256xbf16, #tpu.memory_space<vmem>>, vector<4x256xbf16>
    tpu.vector_store %arg13[%c12, %c0_15], %31 {strides = array<i32>} : memref<100x256xbf16, #tpu.memory_space<vmem>>, vector<4x256xbf16>,
    %c30_i32 = arith.constant 30 : i32
    %33 = tpu.dynamic_rotate %8 by %c30_i32 dim 1 : vector<4x256xf32>, i32 -> vector<4x256xf32>
    %c4_16 = arith.constant 4 : index
    %c0_17 = arith.constant 0 : index
    %34 = vector.load %arg11[%c4_16, %c0_17] : memref<25x256xf32, #tpu.memory_space<vmem>>, vector<1x256xf32>
    %35 = vector.broadcast %34 : vector<1x256xf32> to vector<4x256xf32>
    %36 = arith.mulf %33, %35 : vector<4x256xf32>
    %37 = arith.truncf %36 : vector<4x256xf32> to vector<4x256xbf16>
    %c16 = arith.constant 16 : index
    %c0_18 = arith.constant 0 : index
    %38 = vector.load %arg13[%c16, %c0_18] : memref<100x256xbf16, #tpu.memory_space<vmem>>, vector<4x256xbf16>
    tpu.vector_store %arg13[%c16, %c0_18], %37 {strides = array<i32>} : memref<100x256xbf16, #tpu.memory_space<vmem>>, vector<4x256xbf16>,
    %c18_i32 = arith.constant 18 : i32
    %39 = tpu.dynamic_rotate %8 by %c18_i32 dim 1 : vector<4x256xf32>, i32 -> vector<4x256xf32>
    %c5 = arith.constant 5 : index
    %c0_19 = arith.constant 0 : index
    %40 = vector.load %arg11[%c5, %c0_19] : memref<25x256xf32, #tpu.memory_space<vmem>>, vector<1x256xf32>
    %41 = vector.broadcast %40 : vector<1x256xf32> to vector<4x256xf32>
    %42 = arith.mulf %39, %41 : vector<4x256xf32>
    %43 = arith.truncf %42 : vector<4x256xf32> to vector<4x256xbf16>
    %c20 = arith.constant 20 : index
    %c0_20 = arith.constant 0 : index
    %44 = vector.load %arg13[%c20, %c0_20] : memref<100x256xbf16, #tpu.memory_space<vmem>>, vector<4x256xbf16>
    tpu.vector_store %arg13[%c20, %c0_20], %43 {strides = array<i32>} : memref<100x256xbf16, #tpu.memory_space<vmem>>, vector<4x256xbf16>,
    %c17_i32 = arith.constant 17 : i32
    %45 = tpu.dynamic_rotate %8 by %c17_i32 dim 1 : vector<4x256xf32>, i32 -> vector<4x256xf32>
    %c6 = arith.constant 6 : index
    %c0_21 = arith.constant 0 : index
    %46 = vector.load %arg11[%c6, %c0_21] : memref<25x256xf32, #tpu.memory_space<vmem>>, vector<1x256xf32>
    %47 = vector.broadcast %46 : vector<1x256xf32> to vector<4x256xf32>
    %48 = arith.mulf %45, %47 : vector<4x256xf32>
    %49 = arith.truncf %48 : vector<4x256xf32> to vector<4x256xbf16>
    %c24 = arith.constant 24 : index
    %c0_22 = arith.constant 0 : index
    %50 = vector.load %arg13[%c24, %c0_22] : memref<100x256xbf16, #tpu.memory_space<vmem>>, vector<4x256xbf16>
    tpu.vector_store %arg13[%c24, %c0_22], %49 {strides = array<i32>} : memref<100x256xbf16, #tpu.memory_space<vmem>>, vector<4x256xbf16>,
    %c16_i32 = arith.constant 16 : i32
    %51 = tpu.dynamic_rotate %8 by %c16_i32 dim 1 : vector<4x256xf32>, i32 -> vector<4x256xf32>
    %c7 = arith.constant 7 : index
    %c0_23 = arith.constant 0 : index
    %52 = vector.load %arg11[%c7, %c0_23] : memref<25x256xf32, #tpu.memory_space<vmem>>, vector<1x256xf32>
    %53 = vector.broadcast %52 : vector<1x256xf32> to vector<4x256xf32>
    %54 = arith.mulf %51, %53 : vector<4x256xf32>
    %55 = arith.truncf %54 : vector<4x256xf32> to vector<4x256xbf16>
    %c28 = arith.constant 28 : index
    %c0_24 = arith.constant 0 : index
    %56 = vector.load %arg13[%c28, %c0_24] : memref<100x256xbf16, #tpu.memory_space<vmem>>, vector<4x256xbf16>
    tpu.vector_store %arg13[%c28, %c0_24], %55 {strides = array<i32>} : memref<100x256xbf16, #tpu.memory_space<vmem>>, vector<4x256xbf16>,
    %c15_i32 = arith.constant 15 : i32
    %57 = tpu.dynamic_rotate %8 by %c15_i32 dim 1 : vector<4x256xf32>, i32 -> vector<4x256xf32>
    %c8_25 = arith.constant 8 : index
    %c0_26 = arith.constant 0 : index
    %58 = vector.load %arg11[%c8_25, %c0_26] : memref<25x256xf32, #tpu.memory_space<vmem>>, vector<1x256xf32>
    %59 = vector.broadcast %58 : vector<1x256xf32> to vector<4x256xf32>
    %60 = arith.mulf %57, %59 : vector<4x256xf32>
    %61 = arith.truncf %60 : vector<4x256xf32> to vector<4x256xbf16>
    %c32 = arith.constant 32 : index
    %c0_27 = arith.constant 0 : index
    %62 = vector.load %arg13[%c32, %c0_27] : memref<100x256xbf16, #tpu.memory_space<vmem>>, vector<4x256xbf16>
    tpu.vector_store %arg13[%c32, %c0_27], %61 {strides = array<i32>} : memref<100x256xbf16, #tpu.memory_space<vmem>>, vector<4x256xbf16>,
    %c14_i32 = arith.constant 14 : i32
    %63 = tpu.dynamic_rotate %8 by %c14_i32 dim 1 : vector<4x256xf32>, i32 -> vector<4x256xf32>
    %c9 = arith.constant 9 : index
    %c0_28 = arith.constant 0 : index
    %64 = vector.load %arg11[%c9, %c0_28] : memref<25x256xf32, #tpu.memory_space<vmem>>, vector<1x256xf32>
    %65 = vector.broadcast %64 : vector<1x256xf32> to vector<4x256xf32>
    %66 = arith.mulf %63, %65 : vector<4x256xf32>
    %67 = arith.truncf %66 : vector<4x256xf32> to vector<4x256xbf16>
    %c36 = arith.constant 36 : index
    %c0_29 = arith.constant 0 : index
    %68 = vector.load %arg13[%c36, %c0_29] : memref<100x256xbf16, #tpu.memory_space<vmem>>, vector<4x256xbf16>
    tpu.vector_store %arg13[%c36, %c0_29], %67 {strides = array<i32>} : memref<100x256xbf16, #tpu.memory_space<vmem>>, vector<4x256xbf16>,
    %c2_i32 = arith.constant 2 : i32
    %69 = tpu.dynamic_rotate %8 by %c2_i32 dim 1 : vector<4x256xf32>, i32 -> vector<4x256xf32>
    %c10 = arith.constant 10 : index
    %c0_30 = arith.constant 0 : index
    %70 = vector.load %arg11[%c10, %c0_30] : memref<25x256xf32, #tpu.memory_space<vmem>>, vector<1x256xf32>
    %71 = vector.broadcast %70 : vector<1x256xf32> to vector<4x256xf32>
    %72 = arith.mulf %69, %71 : vector<4x256xf32>
    %73 = arith.truncf %72 : vector<4x256xf32> to vector<4x256xbf16>
    %c40 = arith.constant 40 : index
    %c0_31 = arith.constant 0 : index
    %74 = vector.load %arg13[%c40, %c0_31] : memref<100x256xbf16, #tpu.memory_space<vmem>>, vector<4x256xbf16>
    tpu.vector_store %arg13[%c40, %c0_31], %73 {strides = array<i32>} : memref<100x256xbf16, #tpu.memory_space<vmem>>, vector<4x256xbf16>,
    %c1_i32 = arith.constant 1 : i32
    %75 = tpu.dynamic_rotate %8 by %c1_i32 dim 1 : vector<4x256xf32>, i32 -> vector<4x256xf32>
    %c11 = arith.constant 11 : index
    %c0_32 = arith.constant 0 : index
    %76 = vector.load %arg11[%c11, %c0_32] : memref<25x256xf32, #tpu.memory_space<vmem>>, vector<1x256xf32>
    %77 = vector.broadcast %76 : vector<1x256xf32> to vector<4x256xf32>
    %78 = arith.mulf %75, %77 : vector<4x256xf32>
    %79 = arith.truncf %78 : vector<4x256xf32> to vector<4x256xbf16>
    %c44 = arith.constant 44 : index
    %c0_33 = arith.constant 0 : index
    %80 = vector.load %arg13[%c44, %c0_33] : memref<100x256xbf16, #tpu.memory_space<vmem>>, vector<4x256xbf16>
    tpu.vector_store %arg13[%c44, %c0_33], %79 {strides = array<i32>} : memref<100x256xbf16, #tpu.memory_space<vmem>>, vector<4x256xbf16>,
    %81 = arith.truncf %8 : vector<4x256xf32> to vector<4x256xbf16>
    %c48 = arith.constant 48 : index
    %c0_34 = arith.constant 0 : index
    %82 = vector.load %arg13[%c48, %c0_34] : memref<100x256xbf16, #tpu.memory_space<vmem>>, vector<4x256xbf16>
    tpu.vector_store %arg13[%c48, %c0_34], %81 {strides = array<i32>} : memref<100x256xbf16, #tpu.memory_space<vmem>>, vector<4x256xbf16>,
    %c255_i32 = arith.constant 255 : i32
    %83 = tpu.dynamic_rotate %8 by %c255_i32 dim 1 : vector<4x256xf32>, i32 -> vector<4x256xf32>
    %c13 = arith.constant 13 : index
    %c0_35 = arith.constant 0 : index
    %84 = vector.load %arg11[%c13, %c0_35] : memref<25x256xf32, #tpu.memory_space<vmem>>, vector<1x256xf32>
    %85 = vector.broadcast %84 : vector<1x256xf32> to vector<4x256xf32>
    %86 = arith.mulf %83, %85 : vector<4x256xf32>
    %87 = arith.truncf %86 : vector<4x256xf32> to vector<4x256xbf16>
    %c52 = arith.constant 52 : index
    %c0_36 = arith.constant 0 : index
    %88 = vector.load %arg13[%c52, %c0_36] : memref<100x256xbf16, #tpu.memory_space<vmem>>, vector<4x256xbf16>
    tpu.vector_store %arg13[%c52, %c0_36], %87 {strides = array<i32>} : memref<100x256xbf16, #tpu.memory_space<vmem>>, vector<4x256xbf16>,
    %c254_i32 = arith.constant 254 : i32
    %89 = tpu.dynamic_rotate %8 by %c254_i32 dim 1 : vector<4x256xf32>, i32 -> vector<4x256xf32>
    %c14 = arith.constant 14 : index
    %c0_37 = arith.constant 0 : index
    %90 = vector.load %arg11[%c14, %c0_37] : memref<25x256xf32, #tpu.memory_space<vmem>>, vector<1x256xf32>
    %91 = vector.broadcast %90 : vector<1x256xf32> to vector<4x256xf32>
    %92 = arith.mulf %89, %91 : vector<4x256xf32>
    %93 = arith.truncf %92 : vector<4x256xf32> to vector<4x256xbf16>
    %c56 = arith.constant 56 : index
    %c0_38 = arith.constant 0 : index
    %94 = vector.load %arg13[%c56, %c0_38] : memref<100x256xbf16, #tpu.memory_space<vmem>>, vector<4x256xbf16>
    tpu.vector_store %arg13[%c56, %c0_38], %93 {strides = array<i32>} : memref<100x256xbf16, #tpu.memory_space<vmem>>, vector<4x256xbf16>,
    %c242_i32 = arith.constant 242 : i32
    %95 = tpu.dynamic_rotate %8 by %c242_i32 dim 1 : vector<4x256xf32>, i32 -> vector<4x256xf32>
    %c15 = arith.constant 15 : index
    %c0_39 = arith.constant 0 : index
    %96 = vector.load %arg11[%c15, %c0_39] : memref<25x256xf32, #tpu.memory_space<vmem>>, vector<1x256xf32>
    %97 = vector.broadcast %96 : vector<1x256xf32> to vector<4x256xf32>
    %98 = arith.mulf %95, %97 : vector<4x256xf32>
    %99 = arith.truncf %98 : vector<4x256xf32> to vector<4x256xbf16>
    %c60 = arith.constant 60 : index
    %c0_40 = arith.constant 0 : index
    %100 = vector.load %arg13[%c60, %c0_40] : memref<100x256xbf16, #tpu.memory_space<vmem>>, vector<4x256xbf16>
    tpu.vector_store %arg13[%c60, %c0_40], %99 {strides = array<i32>} : memref<100x256xbf16, #tpu.memory_space<vmem>>, vector<4x256xbf16>,
    %c241_i32 = arith.constant 241 : i32
    %101 = tpu.dynamic_rotate %8 by %c241_i32 dim 1 : vector<4x256xf32>, i32 -> vector<4x256xf32>
    %c16_41 = arith.constant 16 : index
    %c0_42 = arith.constant 0 : index
    %102 = vector.load %arg11[%c16_41, %c0_42] : memref<25x256xf32, #tpu.memory_space<vmem>>, vector<1x256xf32>
    %103 = vector.broadcast %102 : vector<1x256xf32> to vector<4x256xf32>
    %104 = arith.mulf %101, %103 : vector<4x256xf32>
    %105 = arith.truncf %104 : vector<4x256xf32> to vector<4x256xbf16>
    %c64 = arith.constant 64 : index
    %c0_43 = arith.constant 0 : index
    %106 = vector.load %arg13[%c64, %c0_43] : memref<100x256xbf16, #tpu.memory_space<vmem>>, vector<4x256xbf16>
    tpu.vector_store %arg13[%c64, %c0_43], %105 {strides = array<i32>} : memref<100x256xbf16, #tpu.memory_space<vmem>>, vector<4x256xbf16>,
    %c240_i32 = arith.constant 240 : i32
    %107 = tpu.dynamic_rotate %8 by %c240_i32 dim 1 : vector<4x256xf32>, i32 -> vector<4x256xf32>
    %c17 = arith.constant 17 : index
    %c0_44 = arith.constant 0 : index
    %108 = vector.load %arg11[%c17, %c0_44] : memref<25x256xf32, #tpu.memory_space<vmem>>, vector<1x256xf32>
    %109 = vector.broadcast %108 : vector<1x256xf32> to vector<4x256xf32>
    %110 = arith.mulf %107, %109 : vector<4x256xf32>
    %111 = arith.truncf %110 : vector<4x256xf32> to vector<4x256xbf16>
    %c68 = arith.constant 68 : index
    %c0_45 = arith.constant 0 : index
    %112 = vector.load %arg13[%c68, %c0_45] : memref<100x256xbf16, #tpu.memory_space<vmem>>, vector<4x256xbf16>
    tpu.vector_store %arg13[%c68, %c0_45], %111 {strides = array<i32>} : memref<100x256xbf16, #tpu.memory_space<vmem>>, vector<4x256xbf16>,
    %c239_i32 = arith.constant 239 : i32
    %113 = tpu.dynamic_rotate %8 by %c239_i32 dim 1 : vector<4x256xf32>, i32 -> vector<4x256xf32>
    %c18 = arith.constant 18 : index
    %c0_46 = arith.constant 0 : index
    %114 = vector.load %arg11[%c18, %c0_46] : memref<25x256xf32, #tpu.memory_space<vmem>>, vector<1x256xf32>
    %115 = vector.broadcast %114 : vector<1x256xf32> to vector<4x256xf32>
    %116 = arith.mulf %113, %115 : vector<4x256xf32>
    %117 = arith.truncf %116 : vector<4x256xf32> to vector<4x256xbf16>
    %c72 = arith.constant 72 : index
    %c0_47 = arith.constant 0 : index
    %118 = vector.load %arg13[%c72, %c0_47] : memref<100x256xbf16, #tpu.memory_space<vmem>>, vector<4x256xbf16>
    tpu.vector_store %arg13[%c72, %c0_47], %117 {strides = array<i32>} : memref<100x256xbf16, #tpu.memory_space<vmem>>, vector<4x256xbf16>,
    %c238_i32 = arith.constant 238 : i32
    %119 = tpu.dynamic_rotate %8 by %c238_i32 dim 1 : vector<4x256xf32>, i32 -> vector<4x256xf32>
    %c19 = arith.constant 19 : index
    %c0_48 = arith.constant 0 : index
    %120 = vector.load %arg11[%c19, %c0_48] : memref<25x256xf32, #tpu.memory_space<vmem>>, vector<1x256xf32>
    %121 = vector.broadcast %120 : vector<1x256xf32> to vector<4x256xf32>
    %122 = arith.mulf %119, %121 : vector<4x256xf32>
    %123 = arith.truncf %122 : vector<4x256xf32> to vector<4x256xbf16>
    %c76 = arith.constant 76 : index
    %c0_49 = arith.constant 0 : index
    %124 = vector.load %arg13[%c76, %c0_49] : memref<100x256xbf16, #tpu.memory_space<vmem>>, vector<4x256xbf16>
    tpu.vector_store %arg13[%c76, %c0_49], %123 {strides = array<i32>} : memref<100x256xbf16, #tpu.memory_space<vmem>>, vector<4x256xbf16>,
    %c226_i32 = arith.constant 226 : i32
    %125 = tpu.dynamic_rotate %8 by %c226_i32 dim 1 : vector<4x256xf32>, i32 -> vector<4x256xf32>
    %c20_50 = arith.constant 20 : index
    %c0_51 = arith.constant 0 : index
    %126 = vector.load %arg11[%c20_50, %c0_51] : memref<25x256xf32, #tpu.memory_space<vmem>>, vector<1x256xf32>
    %127 = vector.broadcast %126 : vector<1x256xf32> to vector<4x256xf32>
    %128 = arith.mulf %125, %127 : vector<4x256xf32>
    %129 = arith.truncf %128 : vector<4x256xf32> to vector<4x256xbf16>
    %c80 = arith.constant 80 : index
    %c0_52 = arith.constant 0 : index
    %130 = vector.load %arg13[%c80, %c0_52] : memref<100x256xbf16, #tpu.memory_space<vmem>>, vector<4x256xbf16>
    tpu.vector_store %arg13[%c80, %c0_52], %129 {strides = array<i32>} : memref<100x256xbf16, #tpu.memory_space<vmem>>, vector<4x256xbf16>,
    %c225_i32 = arith.constant 225 : i32
    %131 = tpu.dynamic_rotate %8 by %c225_i32 dim 1 : vector<4x256xf32>, i32 -> vector<4x256xf32>
    %c21 = arith.constant 21 : index
    %c0_53 = arith.constant 0 : index
    %132 = vector.load %arg11[%c21, %c0_53] : memref<25x256xf32, #tpu.memory_space<vmem>>, vector<1x256xf32>
    %133 = vector.broadcast %132 : vector<1x256xf32> to vector<4x256xf32>
    %134 = arith.mulf %131, %133 : vector<4x256xf32>
    %135 = arith.truncf %134 : vector<4x256xf32> to vector<4x256xbf16>
    %c84 = arith.constant 84 : index
    %c0_54 = arith.constant 0 : index
    %136 = vector.load %arg13[%c84, %c0_54] : memref<100x256xbf16, #tpu.memory_space<vmem>>, vector<4x256xbf16>
    tpu.vector_store %arg13[%c84, %c0_54], %135 {strides = array<i32>} : memref<100x256xbf16, #tpu.memory_space<vmem>>, vector<4x256xbf16>,
    %c224_i32 = arith.constant 224 : i32
    %137 = tpu.dynamic_rotate %8 by %c224_i32 dim 1 : vector<4x256xf32>, i32 -> vector<4x256xf32>
    %c22 = arith.constant 22 : index
    %c0_55 = arith.constant 0 : index
    %138 = vector.load %arg11[%c22, %c0_55] : memref<25x256xf32, #tpu.memory_space<vmem>>, vector<1x256xf32>
    %139 = vector.broadcast %138 : vector<1x256xf32> to vector<4x256xf32>
    %140 = arith.mulf %137, %139 : vector<4x256xf32>
    %141 = arith.truncf %140 : vector<4x256xf32> to vector<4x256xbf16>
    %c88 = arith.constant 88 : index
    %c0_56 = arith.constant 0 : index
    %142 = vector.load %arg13[%c88, %c0_56] : memref<100x256xbf16, #tpu.memory_space<vmem>>, vector<4x256xbf16>
    tpu.vector_store %arg13[%c88, %c0_56], %141 {strides = array<i32>} : memref<100x256xbf16, #tpu.memory_space<vmem>>, vector<4x256xbf16>,
    %c223_i32 = arith.constant 223 : i32
    %143 = tpu.dynamic_rotate %8 by %c223_i32 dim 1 : vector<4x256xf32>, i32 -> vector<4x256xf32>
    %c23 = arith.constant 23 : index
    %c0_57 = arith.constant 0 : index
    %144 = vector.load %arg11[%c23, %c0_57] : memref<25x256xf32, #tpu.memory_space<vmem>>, vector<1x256xf32>
    %145 = vector.broadcast %144 : vector<1x256xf32> to vector<4x256xf32>
    %146 = arith.mulf %143, %145 : vector<4x256xf32>
    %147 = arith.truncf %146 : vector<4x256xf32> to vector<4x256xbf16>
    %c92 = arith.constant 92 : index
    %c0_58 = arith.constant 0 : index
    %148 = vector.load %arg13[%c92, %c0_58] : memref<100x256xbf16, #tpu.memory_space<vmem>>, vector<4x256xbf16>
    tpu.vector_store %arg13[%c92, %c0_58], %147 {strides = array<i32>} : memref<100x256xbf16, #tpu.memory_space<vmem>>, vector<4x256xbf16>,
    %c222_i32 = arith.constant 222 : i32
    %149 = tpu.dynamic_rotate %8 by %c222_i32 dim 1 : vector<4x256xf32>, i32 -> vector<4x256xf32>
    %c24_59 = arith.constant 24 : index
    %c0_60 = arith.constant 0 : index
    %150 = vector.load %arg11[%c24_59, %c0_60] : memref<25x256xf32, #tpu.memory_space<vmem>>, vector<1x256xf32>
    %151 = vector.broadcast %150 : vector<1x256xf32> to vector<4x256xf32>
    %152 = arith.mulf %149, %151 : vector<4x256xf32>
    %153 = arith.truncf %152 : vector<4x256xf32> to vector<4x256xbf16>
    %c96 = arith.constant 96 : index
    %c0_61 = arith.constant 0 : index
    %154 = vector.load %arg13[%c96, %c0_61] : memref<100x256xbf16, #tpu.memory_space<vmem>>, vector<4x256xbf16>
    tpu.vector_store %arg13[%c96, %c0_61], %153 {strides = array<i32>} : memref<100x256xbf16, #tpu.memory_space<vmem>>, vector<4x256xbf16>,
    %c0_62 = arith.constant 0 : index
    %c0_63 = arith.constant 0 : index
    %155 = vector.load %arg4[%c0_62, %c0_63] : memref<8x100xbf16, #tpu.memory_space<vmem>>, vector<8x100xbf16>
    %c0_64 = arith.constant 0 : index
    %c0_65 = arith.constant 0 : index
    %156 = vector.load %arg13[%c0_64, %c0_65] : memref<100x256xbf16, #tpu.memory_space<vmem>>, vector<100x256xbf16>
    %cst_66 = arith.constant dense<0.000000e+00> : vector<8x256xf32>
    %157 = tpu.matmul %155, %156, %cst_66 {dimension_numbers = #tpu.dot_dimension_numbers<[1], [0], [0], [1], [0, 0, 1, 1], [], []>} : vector<8x100xbf16>, vector<100x256xbf16>, vector<8x256xf32> -> vector<8x256xf32>
    %c0_67 = arith.constant 0 : index
    %c0_68 = arith.constant 0 : index
    %158 = vector.load %arg5[%c0_67, %c0_68] : memref<8x1xf32, #tpu.memory_space<vmem>>, vector<8x1xf32>
    %159 = vector.broadcast %158 : vector<8x1xf32> to vector<8x256xf32>
    %160 = arith.addf %157, %159 : vector<8x256xf32>
    %161 = arith.addf %7, %160 : vector<8x256xf32>
    %162 = vector.extract_strided_slice %6 {offsets = [12, 0], sizes = [4, 256], strides = [1, 1]} : vector<24x256xf32> to vector<4x256xf32>
    %c17_i32_69 = arith.constant 17 : i32
    %163 = tpu.dynamic_rotate %162 by %c17_i32_69 dim 1 : vector<4x256xf32>, i32 -> vector<4x256xf32>
    %c6_70 = arith.constant 6 : index
    %c0_71 = arith.constant 0 : index
    %164 = vector.load %arg11[%c6_70, %c0_71] : memref<25x256xf32, #tpu.memory_space<vmem>>, vector<1x256xf32>
    %165 = vector.broadcast %164 : vector<1x256xf32> to vector<4x256xf32>
    %166 = arith.mulf %163, %165 : vector<4x256xf32>
    %167 = arith.truncf %166 : vector<4x256xf32> to vector<4x256xbf16>
    %c0_72 = arith.constant 0 : index
    %c0_73 = arith.constant 0 : index
    %168 = vector.load %arg14[%c0_72, %c0_73] : memref<36x256xbf16, #tpu.memory_space<vmem>>, vector<4x256xbf16>
    tpu.vector_store %arg14[%c0_72, %c0_73], %167 {strides = array<i32>} : memref<36x256xbf16, #tpu.memory_space<vmem>>, vector<4x256xbf16>,
    %c16_i32_74 = arith.constant 16 : i32
    %169 = tpu.dynamic_rotate %162 by %c16_i32_74 dim 1 : vector<4x256xf32>, i32 -> vector<4x256xf32>
    %c7_75 = arith.constant 7 : index
    %c0_76 = arith.constant 0 : index
    %170 = vector.load %arg11[%c7_75, %c0_76] : memref<25x256xf32, #tpu.memory_space<vmem>>, vector<1x256xf32>
    %171 = vector.broadcast %170 : vector<1x256xf32> to vector<4x256xf32>
    %172 = arith.mulf %169, %171 : vector<4x256xf32>
    %173 = arith.truncf %172 : vector<4x256xf32> to vector<4x256xbf16>
    %c4_77 = arith.constant 4 : index
    %c0_78 = arith.constant 0 : index
    %174 = vector.load %arg14[%c4_77, %c0_78] : memref<36x256xbf16, #tpu.memory_space<vmem>>, vector<4x256xbf16>
    tpu.vector_store %arg14[%c4_77, %c0_78], %173 {strides = array<i32>} : memref<36x256xbf16, #tpu.memory_space<vmem>>, vector<4x256xbf16>,
    %c15_i32_79 = arith.constant 15 : i32
    %175 = tpu.dynamic_rotate %162 by %c15_i32_79 dim 1 : vector<4x256xf32>, i32 -> vector<4x256xf32>
    %c8_80 = arith.constant 8 : index
    %c0_81 = arith.constant 0 : index
    %176 = vector.load %arg11[%c8_80, %c0_81] : memref<25x256xf32, #tpu.memory_space<vmem>>, vector<1x256xf32>
    %177 = vector.broadcast %176 : vector<1x256xf32> to vector<4x256xf32>
    %178 = arith.mulf %175, %177 : vector<4x256xf32>
    %179 = arith.truncf %178 : vector<4x256xf32> to vector<4x256xbf16>
    %c8_82 = arith.constant 8 : index
    %c0_83 = arith.constant 0 : index
    %180 = vector.load %arg14[%c8_82, %c0_83] : memref<36x256xbf16, #tpu.memory_space<vmem>>, vector<4x256xbf16>
    tpu.vector_store %arg14[%c8_82, %c0_83], %179 {strides = array<i32>} : memref<36x256xbf16, #tpu.memory_space<vmem>>, vector<4x256xbf16>,
    %c1_i32_84 = arith.constant 1 : i32
    %181 = tpu.dynamic_rotate %162 by %c1_i32_84 dim 1 : vector<4x256xf32>, i32 -> vector<4x256xf32>
    %c11_85 = arith.constant 11 : index
    %c0_86 = arith.constant 0 : index
    %182 = vector.load %arg11[%c11_85, %c0_86] : memref<25x256xf32, #tpu.memory_space<vmem>>, vector<1x256xf32>
    %183 = vector.broadcast %182 : vector<1x256xf32> to vector<4x256xf32>
    %184 = arith.mulf %181, %183 : vector<4x256xf32>
    %185 = arith.truncf %184 : vector<4x256xf32> to vector<4x256xbf16>
    %c12_87 = arith.constant 12 : index
    %c0_88 = arith.constant 0 : index
    %186 = vector.load %arg14[%c12_87, %c0_88] : memref<36x256xbf16, #tpu.memory_space<vmem>>, vector<4x256xbf16>
    tpu.vector_store %arg14[%c12_87, %c0_88], %185 {strides = array<i32>} : memref<36x256xbf16, #tpu.memory_space<vmem>>, vector<4x256xbf16>,
    %187 = arith.truncf %162 : vector<4x256xf32> to vector<4x256xbf16>
    %c16_89 = arith.constant 16 : index
    %c0_90 = arith.constant 0 : index
    %188 = vector.load %arg14[%c16_89, %c0_90] : memref<36x256xbf16, #tpu.memory_space<vmem>>, vector<4x256xbf16>
    tpu.vector_store %arg14[%c16_89, %c0_90], %187 {strides = array<i32>} : memref<36x256xbf16, #tpu.memory_space<vmem>>, vector<4x256xbf16>,
    %c255_i32_91 = arith.constant 255 : i32
    %189 = tpu.dynamic_rotate %162 by %c255_i32_91 dim 1 : vector<4x256xf32>, i32 -> vector<4x256xf32>
    %c13_92 = arith.constant 13 : index
    %c0_93 = arith.constant 0 : index
    %190 = vector.load %arg11[%c13_92, %c0_93] : memref<25x256xf32, #tpu.memory_space<vmem>>, vector<1x256xf32>
    %191 = vector.broadcast %190 : vector<1x256xf32> to vector<4x256xf32>
    %192 = arith.mulf %189, %191 : vector<4x256xf32>
    %193 = arith.truncf %192 : vector<4x256xf32> to vector<4x256xbf16>
    %c20_94 = arith.constant 20 : index
    %c0_95 = arith.constant 0 : index
    %194 = vector.load %arg14[%c20_94, %c0_95] : memref<36x256xbf16, #tpu.memory_space<vmem>>, vector<4x256xbf16>
    tpu.vector_store %arg14[%c20_94, %c0_95], %193 {strides = array<i32>} : memref<36x256xbf16, #tpu.memory_space<vmem>>, vector<4x256xbf16>,
    %c241_i32_96 = arith.constant 241 : i32
    %195 = tpu.dynamic_rotate %162 by %c241_i32_96 dim 1 : vector<4x256xf32>, i32 -> vector<4x256xf32>
    %c16_97 = arith.constant 16 : index
    %c0_98 = arith.constant 0 : index
    %196 = vector.load %arg11[%c16_97, %c0_98] : memref<25x256xf32, #tpu.memory_space<vmem>>, vector<1x256xf32>
    %197 = vector.broadcast %196 : vector<1x256xf32> to vector<4x256xf32>
    %198 = arith.mulf %195, %197 : vector<4x256xf32>
    %199 = arith.truncf %198 : vector<4x256xf32> to vector<4x256xbf16>
    %c24_99 = arith.constant 24 : index
    %c0_100 = arith.constant 0 : index
    %200 = vector.load %arg14[%c24_99, %c0_100] : memref<36x256xbf16, #tpu.memory_space<vmem>>, vector<4x256xbf16>
    tpu.vector_store %arg14[%c24_99, %c0_100], %199 {strides = array<i32>} : memref<36x256xbf16, #tpu.memory_space<vmem>>, vector<4x256xbf16>,
    %c240_i32_101 = arith.constant 240 : i32
    %201 = tpu.dynamic_rotate %162 by %c240_i32_101 dim 1 : vector<4x256xf32>, i32 -> vector<4x256xf32>
    %c17_102 = arith.constant 17 : index
    %c0_103 = arith.constant 0 : index
    %202 = vector.load %arg11[%c17_102, %c0_103] : memref<25x256xf32, #tpu.memory_space<vmem>>, vector<1x256xf32>
    %203 = vector.broadcast %202 : vector<1x256xf32> to vector<4x256xf32>
    %204 = arith.mulf %201, %203 : vector<4x256xf32>
    %205 = arith.truncf %204 : vector<4x256xf32> to vector<4x256xbf16>
    %c28_104 = arith.constant 28 : index
    %c0_105 = arith.constant 0 : index
    %206 = vector.load %arg14[%c28_104, %c0_105] : memref<36x256xbf16, #tpu.memory_space<vmem>>, vector<4x256xbf16>
    tpu.vector_store %arg14[%c28_104, %c0_105], %205 {strides = array<i32>} : memref<36x256xbf16, #tpu.memory_space<vmem>>, vector<4x256xbf16>,
    %c239_i32_106 = arith.constant 239 : i32
    %207 = tpu.dynamic_rotate %162 by %c239_i32_106 dim 1 : vector<4x256xf32>, i32 -> vector<4x256xf32>
    %c18_107 = arith.constant 18 : index
    %c0_108 = arith.constant 0 : index
    %208 = vector.load %arg11[%c18_107, %c0_108] : memref<25x256xf32, #tpu.memory_space<vmem>>, vector<1x256xf32>
    %209 = vector.broadcast %208 : vector<1x256xf32> to vector<4x256xf32>
    %210 = arith.mulf %207, %209 : vector<4x256xf32>
    %211 = arith.truncf %210 : vector<4x256xf32> to vector<4x256xbf16>
    %c32_109 = arith.constant 32 : index
    %c0_110 = arith.constant 0 : index
    %212 = vector.load %arg14[%c32_109, %c0_110] : memref<36x256xbf16, #tpu.memory_space<vmem>>, vector<4x256xbf16>
    tpu.vector_store %arg14[%c32_109, %c0_110], %211 {strides = array<i32>} : memref<36x256xbf16, #tpu.memory_space<vmem>>, vector<4x256xbf16>,
    %c0_111 = arith.constant 0 : index
    %c0_112 = arith.constant 0 : index
    %213 = vector.load %arg6[%c0_111, %c0_112] : memref<4x36xbf16, #tpu.memory_space<vmem>>, vector<4x36xbf16>
    %c0_113 = arith.constant 0 : index
    %c0_114 = arith.constant 0 : index
    %214 = vector.load %arg14[%c0_113, %c0_114] : memref<36x256xbf16, #tpu.memory_space<vmem>>, vector<36x256xbf16>
    %cst_115 = arith.constant dense<0.000000e+00> : vector<4x256xf32>
    %215 = tpu.matmul %213, %214, %cst_115 {dimension_numbers = #tpu.dot_dimension_numbers<[1], [0], [0], [1], [0, 0, 1, 1], [], []>} : vector<4x36xbf16>, vector<36x256xbf16>, vector<4x256xf32> -> vector<4x256xf32>
    %c0_116 = arith.constant 0 : index
    %c0_117 = arith.constant 0 : index
    %216 = vector.load %arg7[%c0_116, %c0_117] : memref<4x1xf32, #tpu.memory_space<vmem>>, vector<4x1xf32>
    %217 = vector.broadcast %216 : vector<4x1xf32> to vector<4x256xf32>
    %218 = arith.addf %215, %217 : vector<4x256xf32>
    %c17_i32_118 = arith.constant 17 : i32
    %219 = tpu.dynamic_rotate %218 by %c17_i32_118 dim 1 : vector<4x256xf32>, i32 -> vector<4x256xf32>
    %c6_119 = arith.constant 6 : index
    %c0_120 = arith.constant 0 : index
    %220 = vector.load %arg11[%c6_119, %c0_120] : memref<25x256xf32, #tpu.memory_space<vmem>>, vector<1x256xf32>
    %221 = vector.broadcast %220 : vector<1x256xf32> to vector<4x256xf32>
    %222 = arith.mulf %219, %221 : vector<4x256xf32>
    %223 = arith.truncf %222 : vector<4x256xf32> to vector<4x256xbf16>
    %c0_121 = arith.constant 0 : index
    %c0_122 = arith.constant 0 : index
    %224 = vector.load %arg15[%c0_121, %c0_122] : memref<36x256xbf16, #tpu.memory_space<vmem>>, vector<4x256xbf16>
    tpu.vector_store %arg15[%c0_121, %c0_122], %223 {strides = array<i32>} : memref<36x256xbf16, #tpu.memory_space<vmem>>, vector<4x256xbf16>,
    %c16_i32_123 = arith.constant 16 : i32
    %225 = tpu.dynamic_rotate %218 by %c16_i32_123 dim 1 : vector<4x256xf32>, i32 -> vector<4x256xf32>
    %c7_124 = arith.constant 7 : index
    %c0_125 = arith.constant 0 : index
    %226 = vector.load %arg11[%c7_124, %c0_125] : memref<25x256xf32, #tpu.memory_space<vmem>>, vector<1x256xf32>
    %227 = vector.broadcast %226 : vector<1x256xf32> to vector<4x256xf32>
    %228 = arith.mulf %225, %227 : vector<4x256xf32>
    %229 = arith.truncf %228 : vector<4x256xf32> to vector<4x256xbf16>
    %c4_126 = arith.constant 4 : index
    %c0_127 = arith.constant 0 : index
    %230 = vector.load %arg15[%c4_126, %c0_127] : memref<36x256xbf16, #tpu.memory_space<vmem>>, vector<4x256xbf16>
    tpu.vector_store %arg15[%c4_126, %c0_127], %229 {strides = array<i32>} : memref<36x256xbf16, #tpu.memory_space<vmem>>, vector<4x256xbf16>,
    %c15_i32_128 = arith.constant 15 : i32
    %231 = tpu.dynamic_rotate %218 by %c15_i32_128 dim 1 : vector<4x256xf32>, i32 -> vector<4x256xf32>
    %c8_129 = arith.constant 8 : index
    %c0_130 = arith.constant 0 : index
    %232 = vector.load %arg11[%c8_129, %c0_130] : memref<25x256xf32, #tpu.memory_space<vmem>>, vector<1x256xf32>
    %233 = vector.broadcast %232 : vector<1x256xf32> to vector<4x256xf32>
    %234 = arith.mulf %231, %233 : vector<4x256xf32>
    %235 = arith.truncf %234 : vector<4x256xf32> to vector<4x256xbf16>
    %c8_131 = arith.constant 8 : index
    %c0_132 = arith.constant 0 : index
    %236 = vector.load %arg15[%c8_131, %c0_132] : memref<36x256xbf16, #tpu.memory_space<vmem>>, vector<4x256xbf16>
    tpu.vector_store %arg15[%c8_131, %c0_132], %235 {strides = array<i32>} : memref<36x256xbf16, #tpu.memory_space<vmem>>, vector<4x256xbf16>,
    %c1_i32_133 = arith.constant 1 : i32
    %237 = tpu.dynamic_rotate %218 by %c1_i32_133 dim 1 : vector<4x256xf32>, i32 -> vector<4x256xf32>
    %c11_134 = arith.constant 11 : index
    %c0_135 = arith.constant 0 : index
    %238 = vector.load %arg11[%c11_134, %c0_135] : memref<25x256xf32, #tpu.memory_space<vmem>>, vector<1x256xf32>
    %239 = vector.broadcast %238 : vector<1x256xf32> to vector<4x256xf32>
    %240 = arith.mulf %237, %239 : vector<4x256xf32>
    %241 = arith.truncf %240 : vector<4x256xf32> to vector<4x256xbf16>
    %c12_136 = arith.constant 12 : index
    %c0_137 = arith.constant 0 : index
    %242 = vector.load %arg15[%c12_136, %c0_137] : memref<36x256xbf16, #tpu.memory_space<vmem>>, vector<4x256xbf16>
    tpu.vector_store %arg15[%c12_136, %c0_137], %241 {strides = array<i32>} : memref<36x256xbf16, #tpu.memory_space<vmem>>, vector<4x256xbf16>,
    %243 = arith.truncf %218 : vector<4x256xf32> to vector<4x256xbf16>
    %c16_138 = arith.constant 16 : index
    %c0_139 = arith.constant 0 : index
    %244 = vector.load %arg15[%c16_138, %c0_139] : memref<36x256xbf16, #tpu.memory_space<vmem>>, vector<4x256xbf16>
    tpu.vector_store %arg15[%c16_138, %c0_139], %243 {strides = array<i32>} : memref<36x256xbf16, #tpu.memory_space<vmem>>, vector<4x256xbf16>,
    %c255_i32_140 = arith.constant 255 : i32
    %245 = tpu.dynamic_rotate %218 by %c255_i32_140 dim 1 : vector<4x256xf32>, i32 -> vector<4x256xf32>
    %c13_141 = arith.constant 13 : index
    %c0_142 = arith.constant 0 : index
    %246 = vector.load %arg11[%c13_141, %c0_142] : memref<25x256xf32, #tpu.memory_space<vmem>>, vector<1x256xf32>
    %247 = vector.broadcast %246 : vector<1x256xf32> to vector<4x256xf32>
    %248 = arith.mulf %245, %247 : vector<4x256xf32>
    %249 = arith.truncf %248 : vector<4x256xf32> to vector<4x256xbf16>
    %c20_143 = arith.constant 20 : index
    %c0_144 = arith.constant 0 : index
    %250 = vector.load %arg15[%c20_143, %c0_144] : memref<36x256xbf16, #tpu.memory_space<vmem>>, vector<4x256xbf16>
    tpu.vector_store %arg15[%c20_143, %c0_144], %249 {strides = array<i32>} : memref<36x256xbf16, #tpu.memory_space<vmem>>, vector<4x256xbf16>,
    %c241_i32_145 = arith.constant 241 : i32
    %251 = tpu.dynamic_rotate %218 by %c241_i32_145 dim 1 : vector<4x256xf32>, i32 -> vector<4x256xf32>
    %c16_146 = arith.constant 16 : index
    %c0_147 = arith.constant 0 : index
    %252 = vector.load %arg11[%c16_146, %c0_147] : memref<25x256xf32, #tpu.memory_space<vmem>>, vector<1x256xf32>
    %253 = vector.broadcast %252 : vector<1x256xf32> to vector<4x256xf32>
    %254 = arith.mulf %251, %253 : vector<4x256xf32>
    %255 = arith.truncf %254 : vector<4x256xf32> to vector<4x256xbf16>
    %c24_148 = arith.constant 24 : index
    %c0_149 = arith.constant 0 : index
    %256 = vector.load %arg15[%c24_148, %c0_149] : memref<36x256xbf16, #tpu.memory_space<vmem>>, vector<4x256xbf16>
    tpu.vector_store %arg15[%c24_148, %c0_149], %255 {strides = array<i32>} : memref<36x256xbf16, #tpu.memory_space<vmem>>, vector<4x256xbf16>,
    %c240_i32_150 = arith.constant 240 : i32
    %257 = tpu.dynamic_rotate %218 by %c240_i32_150 dim 1 : vector<4x256xf32>, i32 -> vector<4x256xf32>
    %c17_151 = arith.constant 17 : index
    %c0_152 = arith.constant 0 : index
    %258 = vector.load %arg11[%c17_151, %c0_152] : memref<25x256xf32, #tpu.memory_space<vmem>>, vector<1x256xf32>
    %259 = vector.broadcast %258 : vector<1x256xf32> to vector<4x256xf32>
    %260 = arith.mulf %257, %259 : vector<4x256xf32>
    %261 = arith.truncf %260 : vector<4x256xf32> to vector<4x256xbf16>
    %c28_153 = arith.constant 28 : index
    %c0_154 = arith.constant 0 : index
    %262 = vector.load %arg15[%c28_153, %c0_154] : memref<36x256xbf16, #tpu.memory_space<vmem>>, vector<4x256xbf16>
    tpu.vector_store %arg15[%c28_153, %c0_154], %261 {strides = array<i32>} : memref<36x256xbf16, #tpu.memory_space<vmem>>, vector<4x256xbf16>,
    %c239_i32_155 = arith.constant 239 : i32
    %263 = tpu.dynamic_rotate %218 by %c239_i32_155 dim 1 : vector<4x256xf32>, i32 -> vector<4x256xf32>
    %c18_156 = arith.constant 18 : index
    %c0_157 = arith.constant 0 : index
    %264 = vector.load %arg11[%c18_156, %c0_157] : memref<25x256xf32, #tpu.memory_space<vmem>>, vector<1x256xf32>
    %265 = vector.broadcast %264 : vector<1x256xf32> to vector<4x256xf32>
    %266 = arith.mulf %263, %265 : vector<4x256xf32>
    %267 = arith.truncf %266 : vector<4x256xf32> to vector<4x256xbf16>
    %c32_158 = arith.constant 32 : index
    %c0_159 = arith.constant 0 : index
    %268 = vector.load %arg15[%c32_158, %c0_159] : memref<36x256xbf16, #tpu.memory_space<vmem>>, vector<4x256xbf16>
    tpu.vector_store %arg15[%c32_158, %c0_159], %267 {strides = array<i32>} : memref<36x256xbf16, #tpu.memory_space<vmem>>, vector<4x256xbf16>,
    %c0_160 = arith.constant 0 : index
    %c0_161 = arith.constant 0 : index
    %269 = vector.load %arg8[%c0_160, %c0_161] : memref<8x36xbf16, #tpu.memory_space<vmem>>, vector<8x36xbf16>
    %c0_162 = arith.constant 0 : index
    %c0_163 = arith.constant 0 : index
    %270 = vector.load %arg15[%c0_162, %c0_163] : memref<36x256xbf16, #tpu.memory_space<vmem>>, vector<36x256xbf16>
    %cst_164 = arith.constant dense<0.000000e+00> : vector<8x256xf32>
    %271 = tpu.matmul %269, %270, %cst_164 {dimension_numbers = #tpu.dot_dimension_numbers<[1], [0], [0], [1], [0, 0, 1, 1], [], []>} : vector<8x36xbf16>, vector<36x256xbf16>, vector<8x256xf32> -> vector<8x256xf32>
    %c0_165 = arith.constant 0 : index
    %c0_166 = arith.constant 0 : index
    %272 = vector.load %arg9[%c0_165, %c0_166] : memref<8x1xf32, #tpu.memory_space<vmem>>, vector<8x1xf32>
    %273 = vector.broadcast %272 : vector<8x1xf32> to vector<8x256xf32>
    %274 = arith.addf %271, %273 : vector<8x256xf32>
    %275 = arith.addf %161, %274 : vector<8x256xf32>
    %276 = vector.extract_strided_slice %6 {offsets = [16, 0], sizes = [8, 256], strides = [1, 1]} : vector<24x256xf32> to vector<8x256xf32>
    %c16_i32_167 = arith.constant 16 : i32
    %277 = tpu.dynamic_rotate %276 by %c16_i32_167 dim 1 : vector<8x256xf32>, i32 -> vector<8x256xf32>
    %c7_168 = arith.constant 7 : index
    %c0_169 = arith.constant 0 : index
    %278 = vector.load %arg11[%c7_168, %c0_169] : memref<25x256xf32, #tpu.memory_space<vmem>>, vector<1x256xf32>
    %279 = vector.broadcast %278 : vector<1x256xf32> to vector<8x256xf32>
    %280 = arith.mulf %277, %279 : vector<8x256xf32>
    %281 = arith.addf %276, %280 : vector<8x256xf32>
    %c240_i32_170 = arith.constant 240 : i32
    %282 = tpu.dynamic_rotate %276 by %c240_i32_170 dim 1 : vector<8x256xf32>, i32 -> vector<8x256xf32>
    %c17_171 = arith.constant 17 : index
    %c0_172 = arith.constant 0 : index
    %283 = vector.load %arg11[%c17_171, %c0_172] : memref<25x256xf32, #tpu.memory_space<vmem>>, vector<1x256xf32>
    %284 = vector.broadcast %283 : vector<1x256xf32> to vector<8x256xf32>
    %285 = arith.mulf %282, %284 : vector<8x256xf32>
    %286 = arith.addf %281, %285 : vector<8x256xf32>
    %c1_i32_173 = arith.constant 1 : i32
    %287 = tpu.dynamic_rotate %286 by %c1_i32_173 dim 1 : vector<8x256xf32>, i32 -> vector<8x256xf32>
    %c11_174 = arith.constant 11 : index
    %c0_175 = arith.constant 0 : index
    %288 = vector.load %arg11[%c11_174, %c0_175] : memref<25x256xf32, #tpu.memory_space<vmem>>, vector<1x256xf32>
    %289 = vector.broadcast %288 : vector<1x256xf32> to vector<8x256xf32>
    %290 = arith.mulf %287, %289 : vector<8x256xf32>
    %291 = arith.addf %286, %290 : vector<8x256xf32>
    %c255_i32_176 = arith.constant 255 : i32
    %292 = tpu.dynamic_rotate %286 by %c255_i32_176 dim 1 : vector<8x256xf32>, i32 -> vector<8x256xf32>
    %c13_177 = arith.constant 13 : index
    %c0_178 = arith.constant 0 : index
    %293 = vector.load %arg11[%c13_177, %c0_178] : memref<25x256xf32, #tpu.memory_space<vmem>>, vector<1x256xf32>
    %294 = vector.broadcast %293 : vector<1x256xf32> to vector<8x256xf32>
    %295 = arith.mulf %292, %294 : vector<8x256xf32>
    %296 = arith.addf %291, %295 : vector<8x256xf32>
    %297 = arith.addf %275, %296 : vector<8x256xf32>
    %c0_179 = arith.constant 0 : index
    %c0_180 = arith.constant 0 : index
    %298 = vector.load %arg10[%c0_179, %c0_180] : memref<8x1xf32, #tpu.memory_space<vmem>>, vector<8x1xf32>
    %299 = vector.broadcast %298 : vector<8x1xf32> to vector<8x256xf32>
    %300 = arith.addf %297, %299 : vector<8x256xf32>
    %c0_181 = arith.constant 0 : index
    %c0_182 = arith.constant 0 : index
    %c0_183 = arith.constant 0 : index
    %301 = vector.load %arg12[%c0_181, %c0_182, %c0_183] : memref<1x8x256xf32, #tpu.memory_space<vmem>>, vector<1x8x256xf32>
    %302 = vector.shape_cast %301 : vector<1x8x256xf32> to vector<8x256xf32>
    %303 = vector.shape_cast %300 : vector<8x256xf32> to vector<1x8x256xf32>
    tpu.vector_store %arg12[%c0_181, %c0_182, %c0_183], %303 {strides = array<i32>} : memref<1x8x256xf32, #tpu.memory_space<vmem>>, vector<1x8x256xf32>,
    return
  }
  func.func @transform_0(%arg0: i32) -> (i32, i32, i32) {
    %c0_i32 = arith.constant 0 : i32
    %c0_i32_0 = arith.constant 0 : i32
    %c0_i32_1 = arith.constant 0 : i32
    return %arg0, %c0_i32, %c0_i32_0 : i32, i32, i32
  }
  func.func @transform_1(%arg0: i32) -> (i32, i32) {
    %c0_i32 = arith.constant 0 : i32
    %c0_i32_0 = arith.constant 0 : i32
    %c0_i32_1 = arith.constant 0 : i32
    return %c0_i32, %c0_i32_0 : i32, i32
  }
  func.func @transform_2(%arg0: i32) -> (i32, i32) {
    %c0_i32 = arith.constant 0 : i32
    %c0_i32_0 = arith.constant 0 : i32
    %c0_i32_1 = arith.constant 0 : i32
    return %c0_i32, %c0_i32_0 : i32, i32
  }
  func.func @transform_3(%arg0: i32) -> (i32, i32) {
    %c0_i32 = arith.constant 0 : i32
    %c0_i32_0 = arith.constant 0 : i32
    %c0_i32_1 = arith.constant 0 : i32
    return %c0_i32, %c0_i32_0 : i32, i32
  }
  func.func @transform_4(%arg0: i32) -> (i32, i32) {
    %c0_i32 = arith.constant 0 : i32
    %c0_i32_0 = arith.constant 0 : i32
    %c0_i32_1 = arith.constant 0 : i32
    return %c0_i32, %c0_i32_0 : i32, i32
  }
  func.func @transform_5(%arg0: i32) -> (i32, i32) {
    %c0_i32 = arith.constant 0 : i32
    %c0_i32_0 = arith.constant 0 : i32
    %c0_i32_1 = arith.constant 0 : i32
    return %c0_i32, %c0_i32_0 : i32, i32
  }
  func.func @transform_6(%arg0: i32) -> (i32, i32) {
    %c0_i32 = arith.constant 0 : i32
    %c0_i32_0 = arith.constant 0 : i32
    %c0_i32_1 = arith.constant 0 : i32
    return %c0_i32, %c0_i32_0 : i32, i32
  }
  func.func @transform_7(%arg0: i32) -> (i32, i32) {
    %c0_i32 = arith.constant 0 : i32
    %c0_i32_0 = arith.constant 0 : i32
    %c0_i32_1 = arith.constant 0 : i32
    return %c0_i32, %c0_i32_0 : i32, i32
  }
  func.func @transform_8(%arg0: i32) -> (i32, i32) {
    %c0_i32 = arith.constant 0 : i32
    %c0_i32_0 = arith.constant 0 : i32
    %c0_i32_1 = arith.constant 0 : i32
    return %c0_i32, %c0_i32_0 : i32, i32
  }
  func.func @transform_9(%arg0: i32) -> (i32, i32) {
    %c0_i32 = arith.constant 0 : i32
    %c0_i32_0 = arith.constant 0 : i32
    %c0_i32_1 = arith.constant 0 : i32
    return %c0_i32, %c0_i32_0 : i32, i32
  }
  func.func @transform_10(%arg0: i32) -> (i32, i32) {
    %c0_i32 = arith.constant 0 : i32
    %c0_i32_0 = arith.constant 0 : i32
    %c0_i32_1 = arith.constant 0 : i32
    return %c0_i32, %c0_i32_0 : i32, i32
  }
  func.func @transform_11(%arg0: i32) -> (i32, i32, i32) {
    %c0_i32 = arith.constant 0 : i32
    %c0_i32_0 = arith.constant 0 : i32
    %c0_i32_1 = arith.constant 0 : i32
    return %arg0, %c0_i32, %c0_i32_0 : i32, i32, i32
  }
}

</mosaic_0001>

<bundles_post_ra>
// kernel: inception_forward.1
= control target key start
LH: loop header
LB: loop body
LE: loop exit
PB: predicated region body
PF: predicated region fallthrough
CT: control target
= control target key end

     0   :  { %s2564_s17 = smov 0   ;;  %s3138_s0 = inlined_call_operand.vmem [shape: bf16[2,4,256], index: 0, kind: input, shape index: {}]   ;;  %s3139_s1 = inlined_call_operand.vmem [shape: bf16[24,4], index: 1, kind: input, shape index: {}]   ;;  %s3140_s2 = inlined_call_operand.vmem [shape: f32[24,1], index: 2, kind: input, shape index: {}]   ;;  %s3141_s3 = inlined_call_operand.vmem [shape: bf16[8,100], index: 3, kind: input, shape index: {}]   ;;  %s3142_s4 = inlined_call_operand.vmem [shape: f32[8,1], index: 4, kind: input, shape index: {}]   ;;  %s3143_s5 = inlined_call_operand.vmem [shape: bf16[4,36], index: 5, kind: input, shape index: {}]   ;;  %s3144_s6 = inlined_call_operand.vmem [shape: f32[4,1], index: 6, kind: input, shape index: {}]   ;;  %s3145_s7 = inlined_call_operand.vmem [shape: bf16[8,36], index: 7, kind: input, shape index: {}]   ;;  %s3146_s8 = inlined_call_operand.vmem [shape: f32[8,1], index: 8, kind: input, shape index: {}]   ;;  %s3147_s9 = inlined_call_operand.vmem [shape: f32[8,1], index: 9, kind: input, shape index: {}]   ;;  %s3148_s10 = inlined_call_operand.vmem [shape: f32[25,256], index: 10, kind: input, shape index: {}]   ;;  %s3149_s11 = inlined_call_operand.vmem [shape: f32[2,8,256], index: 11, kind: output, shape index: {}]  }
   0x1 LB: > { %s2219_s18 = sadd.s32 4294967295, %s2477_s17   ;;  %p2223_p0 = scmp.ge.s32.totalorder %s2477_s17, 1  ;;  %s2477_s17 = sphi %s2564_s17, %s21_s17  }
   0x2   : > { %p337_p1 = scmp.lt.s32.totalorder %s2477_s17, 3 }
   0x4   : > { %p338_p2 = pnand %p2223_p0, %p337_p1 }
   0x5   : > { %p377_p3 = scmp.lt.s32.totalorder (!%p338_p2), %s2219_s18, 1  ;;  %v2479_v0 = vmov (!%p338_p2), 0   ;;  %v393_v1 = vld [vmem:[%s3140_s2 + $0x8] sm:$0xff] (!%p338_p2)  ;;  %vm434_vm0 = vcmask (!%p338_p2), 1041408   ;;  %v2433_v5 = vld [vmem:[%s3139_s1] sm:$0xff] (!%p338_p2)   ;;  %vm427_vm1 = vcmask (!%p338_p2), 31744   ;;  %v496_v19 = vlaneseq (!%p338_p2) }
   0x6   : > { %341 = sbr.rel (%p338_p2) target bundleno = 1042 (0x412), region = 64  ;;  %473 = vmatprep.mubr.bf16.mxu0 (!%p338_p2), %v2479_v0  ;;  %2431 = vset.pattern.permute.xlu0 (!%p338_p2), %v2479_v0  ;;  %s2480_s27 = smov (!%p338_p2), 1   ;;  %v2437_v17 = vld [vmem:[%s3139_s1 + $0x8] ss:$0 sps:$4 sm:$0xff] (!%p338_p2)   ;;  %v1648_v18 = vld [vmem:[%s3144_s6] sm:$0xf] (!%p338_p2) }
   0x7   : > { %402 = vperm.xlu0 (!%p338_p2), %2431, %v393_v1   ;;  %2432 = vset.pattern.permute.xlu1 (!%p338_p2), %v2479_v0  ;;  %s2481_s28 = smov (!%p338_p2), 16   ;;  %s2482_s29 = smov (!%p338_p2), 17   ;;  %v504_v20 = vshrl.u32 (!%p338_p2), %v496_v19, 7  ;;  %v2685_v21 = vand.u32 (!%p338_p2), 127, %v496_v19  ;;  %vm1679_vm10 = vcmask (!%p338_p2), 293888  }
   0x8   : > { %1385 = vmatprep.mubr.bf16.mxu1 (!%p338_p2), %v2479_v0  ;;  %s2483_s30 = smov (!%p338_p2), 15   ;;  %s2484_s12 = smov (!%p338_p2), 127   ;;  %v2304_v24 = vld [vmem:[%s3148_s10 + $0x13] ss:$8 sm:$0x3] (!%p338_p2) }
   0x9   : > { %s2485_s13 = smov (!%p338_p2), 112   ;;  %s2486_s16 = smov (!%p338_p2), 113   ;;  %v2687_v22 = vsub.s32 (!%p338_p2), 0, %v504_v20  ;;  %v2689_v23 = vsub.s32 (!%p338_p2), 1, %v504_v20  ;;  %vm843_vm2 = vcmp.lt.s32.totalorder (!%p338_p2), %v2685_v21, 1  ;;  %vm686_vm3 = vcmp.lt.s32.totalorder (!%p338_p2), %v2685_v21, 17 }
   0xa   : > { %s2487_s19 = smov (!%p338_p2), 111   ;;  %s2488_s22 = smov (!%p338_p2), 33   ;;  %v2298_v29 = vld [vmem:[%s3148_s10 + $0x6] ss:$8 sm:$0x3] (!%p338_p2)  ;;  %vm749_vm4 = vcmp.lt.s32.totalorder (!%p338_p2), %v2685_v21, 15 }
   0xb   : > { %s2489_s23 = smov (!%p338_p2), 31   ;;  %s2491_s25 = smov (!%p338_p2), 32   ;;  %v1501_v27 = vrot.slane (!%p338_p2), %v2304_v24, %v2687_v22  ;;  %v1505_v28 = vrot.slane (!%p338_p2), %v2304_v24, %v2689_v23  ;;  %v1413_v34 = vrot.slane (!%p338_p2), %v2298_v29, %v2687_v22  ;;  %v1417_v37 = vrot.slane (!%p338_p2), %v2298_v29, %v2689_v23  ;;  %v2302_v38 = vld [vmem:[%s3148_s10 + $0x10] ss:$8 sm:$0x3] (!%p338_p2) }
   0xc   : > { %s2492_s26 = smov (!%p338_p2), 18   ;;  %s2493_s14 = smov (!%p338_p2), 30   ;;  %v1472_v44 = vrot.slane (!%p338_p2), %v2302_v38, %v2687_v22  ;;  %v2300_v45 = vld [vmem:[%s3148_s10 + $0x7] ss:$8 sm:$0x3] (!%p338_p2)  ;;  %v1476_v49 = vrot.slane (!%p338_p2), %v2302_v38, %v2689_v23  ;;  %vm717_vm5 = vcmp.lt.s32.totalorder (!%p338_p2), %v2685_v21, 16 }
   0xd   : > { %s3151_s18 = smov (!%p377_p3, %s2219_s18), 1  ;;  %s2494_s15 = smov 14   ;;  %v2307_v50 = vld [vmem:[%s3148_s10 + $0x15] ss:$8 sm:$0x3]  ;;  %v1442_v54 = vrot.slane %v2300_v45, %v2687_v22  ;;  %v1446_v57 = vrot.slane %v2300_v45, %v2689_v23  ;;  %vm884_vm6 = vcmp.lt.s32.totalorder %v2685_v21, 127 }
   0xe   : > { %s2354_s21 = sshll.u32 %s3151_s18, 2  ;;  %s2495_s20 = smov 2   ;;  %v2311_v58 = vld [vmem:[%s3148_s10 + $0x21] ss:$8 sm:$0x3]  ;;  %v1535_v61 = vrot.slane %v2307_v50, %v2687_v22  ;;  %v1539_v62 = vrot.slane %v2307_v50, %v2689_v23  ;;  %vm1010_vm7 = vcmp.lt.s32.totalorder %v2685_v21, 112 }
   0xf   : > { %s381_s24 = scalar_lea.vmem %s3138_s0, %s2354_s21  ;;  %s2496_s21 = smov 114   ;;  %vm979_vm8 = vcmp.lt.s32.totalorder %v2685_v21, 113  ;;  %vm1042_vm9 = vcmp.lt.s32.totalorder %v2685_v21, 111  ;;  %vm528_vm11 = vcmp.lt.s32.totalorder %v2685_v21, 33  ;;  %vm591_vm12 = vcmp.lt.s32.totalorder %v2685_v21, 31 }
  0x10   : > { %v2230_v2 = vld.sshfl [vmem:[%s381_s24] sm:$0x33 pattern:$0x76325410]  ;;  %s2490_s24 = smov 34   ;;  %vm498_vm13 = vcmp.lt.s32.totalorder %v2685_v21, 34 }
  0x11   : > { %v426_v3 = vcombine.high %v2230_v2, %v2230_v2  ;;  %v436_v4 = vsel %vm434_vm0, %v2230_v2, 0  ;;  %vm560_vm14 = vcmp.lt.s32.totalorder %v2685_v21, 32  ;;  %vm654_vm15 = vcmp.lt.s32.totalorder %v2685_v21, 18 }
  0x13   : > { %2231 = vmatprep.subr.msk.bf16.mxu0 %vm434_vm0, %v426_v3  ;;  %v1594_v3 = vrot.slane %v2311_v58, %v2687_v22 }
  0x14   : > { %442 = vmatpush1.bf16.msra.mxu0 %v436_v4  ;;  %v1598_v4 = vrot.slane %v2311_v58, %v2689_v23 }
  0x17   : > { %2232 = vmatmul.mubr.msk.bf16.vlgmr.msra.gmra.mrb[0].mxu0 %vm427_vm1, %v2433_v5 }
  0x18   : > { %483 = vmatprep.mubr.bf16.mxu0 %v2479_v0 }
  0x1f   : > { %2233 = vmatmul.mubr.msk.bf16.gmra.mrb[4].mxu0 %vm427_vm1, %v2437_v17  ;;  %vm623_vm1 = vcmp.lt.s32.totalorder %v2685_v21, 30 }
  0x20   : > { %1721 = vmatprep.mubr.bf16.mxu0 %v2479_v0 }
  0x86   : > { %v403_v7 = vpop.permute.xlu0 %402 }
  0xea   : > { %v2592_v6 = vpop.f32.mrb[0].mxu0 }
  0xeb   : > { %v2594_v8 = vpop.f32.mrb[1].mxu0 }
  0xec   : > { %v479_v9 = vpop.f32.mrb[2].mxu0 }
  0xed   : > { %v2596_v10 = vadd.f32 %v479_v9, %v403_v7  ;;  %v481_v11 = vpop.f32.mrb[3].mxu0 }
  0xee   : > { %v2598_v12 = vadd.f32 %v481_v11, %v403_v7 }
  0xef   : > { %v1398_v13 = vrot.slane %v2596_v10, 4 }
  0xf0   : > { %v2368_v14 = vpack.c.bf16 %v2598_v12, %v2596_v10  ;;  %v1399_v15 = vrot.slane %v2598_v12, 4 }
  0xf1   : > { %1490 = vrot.lane.b32.xlu1 %v1398_v13, %s2480_s27  ;;  %1431 = vrot.lane.b32.xlu0 %v1398_v13, %s2481_s28 }
  0xf2   : > { %879 = vst [vmem:[#allocation2 + $0x30] sm:$0x33] %v2368_v14  ;;  %v2306_v16 = vrot.slane %v2368_v14, 10 }
  0xf4   : > { %1523 = vst [vmem:[#allocation3 + $0x10] sm:$0x33] %v2306_v16 }
  0xf5   : > { %1402 = vrot.lane.b32.xlu1 %v1398_v13, %s2482_s29  ;;  %1492 = vrot.lane.b32.xlu0 %v1399_v15, %s2480_s27 }
  0xf9   : > { %1461 = vrot.lane.b32.xlu1 %v1398_v13, %s2483_s30  ;;  %1404 = vrot.lane.b32.xlu0 %v1399_v15, %s2482_s29 }
  0xfd   : > { %1524 = vrot.lane.b32.xlu1 %v1398_v13, %s2484_s12  ;;  %1463 = vrot.lane.b32.xlu0 %v1399_v15, %s2483_s30 }
 0x101   : > { %1433 = vrot.lane.b32.xlu1 %v1399_v15, %s2481_s28  ;;  %1526 = vrot.lane.b32.xlu0 %v1399_v15, %s2484_s12 }
 0x105   : > { %1583 = vrot.lane.b32.xlu1 %v1398_v13, %s2485_s13  ;;  %1585 = vrot.lane.b32.xlu0 %v1399_v15, %s2485_s13 }
 0x109   : > { %1554 = vrot.lane.b32.xlu1 %v1398_v13, %s2486_s16  ;;  %1556 = vrot.lane.b32.xlu0 %v1399_v15, %s2486_s16 }
 0x10d   : > { %1613 = vrot.lane.b32.xlu1 %v1398_v13, %s2487_s19  ;;  %1615 = vrot.lane.b32.xlu0 %v1399_v15, %s2487_s19  ;;  %v2309_v15 = vld [vmem:[%s3148_s10 + $0x20] ss:$8 sm:$0x3] }
 0x111   : > { %1651 = vperm.xlu1 %2432, %v1648_v18   ;;  %524 = vrot.lane.b32.xlu0 %v2596_v10, %s2488_s22 }
 0x115   : > { %526 = vrot.lane.b32.xlu1 %v2598_v12, %s2488_s22  ;;  %587 = vrot.lane.b32.xlu0 %v2596_v10, %s2489_s23  ;;  %s2497_s22 = smov 126  }
 0x119   : > { %589 = vrot.lane.b32.xlu1 %v2598_v12, %s2489_s23  ;;  %492 = vrot.lane.b32.xlu0 %v2596_v10, %s2490_s24  ;;  %s2498_s23 = smov 110  }
 0x11d   : > { %494 = vrot.lane.b32.xlu1 %v2598_v12, %s2490_s24  ;;  %556 = vrot.lane.b32.xlu0 %v2596_v10, %s2491_s25  ;;  %s2499_s24 = smov 97  }
 0x121   : > { %558 = vrot.lane.b32.xlu1 %v2598_v12, %s2491_s25  ;;  %650 = vrot.lane.b32.xlu0 %v2596_v10, %s2492_s26  ;;  %s2500_s25 = smov 95  }
 0x125   : > { %652 = vrot.lane.b32.xlu1 %v2598_v12, %s2492_s26  ;;  %713 = vrot.lane.b32.xlu0 %v2596_v10, %s2481_s28 }
 0x129   : > { %715 = vrot.lane.b32.xlu1 %v2598_v12, %s2481_s28  ;;  %619 = vrot.lane.b32.xlu0 %v2596_v10, %s2493_s14 }
 0x12d   : > { %621 = vrot.lane.b32.xlu1 %v2598_v12, %s2493_s14  ;;  %682 = vrot.lane.b32.xlu0 %v2596_v10, %s2482_s29  ;;  %s2503_s14 = smov 94  }
 0x131   : > { %684 = vrot.lane.b32.xlu1 %v2598_v12, %s2482_s29  ;;  %776 = vrot.lane.b32.xlu0 %v2596_v10, %s2494_s15 }
 0x135   : > { %778 = vrot.lane.b32.xlu1 %v2598_v12, %s2494_s15  ;;  %839 = vrot.lane.b32.xlu0 %v2596_v10, %s2480_s27  ;;  %s2501_s15 = smov 98  }
 0x139   : > { %841 = vrot.lane.b32.xlu1 %v2598_v12, %s2480_s27  ;;  %745 = vrot.lane.b32.xlu0 %v2596_v10, %s2483_s30 }
 0x13d   : > { %747 = vrot.lane.b32.xlu1 %v2598_v12, %s2483_s30  ;;  %808 = vrot.lane.b32.xlu0 %v2596_v10, %s2495_s20 }
 0x141   : > { %810 = vrot.lane.b32.xlu1 %v2598_v12, %s2495_s20  ;;  %880 = vrot.lane.b32.xlu0 %v2596_v10, %s2484_s12 }
 0x145   : > { %882 = vrot.lane.b32.xlu1 %v2598_v12, %s2484_s12  ;;  %943 = vrot.lane.b32.xlu0 %v2596_v10, %s2496_s21 }
 0x149   : > { %945 = vrot.lane.b32.xlu1 %v2598_v12, %s2496_s21  ;;  %912 = vrot.lane.b32.xlu0 %v2596_v10, %s2497_s22 }
 0x14d   : > { %914 = vrot.lane.b32.xlu1 %v2598_v12, %s2497_s22  ;;  %1006 = vrot.lane.b32.xlu0 %v2596_v10, %s2485_s13  ;;  %s2502_s22 = smov 96  }
 0x151   : > { %1008 = vrot.lane.b32.xlu1 %v2598_v12, %s2485_s13  ;;  %1069 = vrot.lane.b32.xlu0 %v2596_v10, %s2498_s23 }
 0x155   : > { %1071 = vrot.lane.b32.xlu1 %v2598_v12, %s2498_s23  ;;  %975 = vrot.lane.b32.xlu0 %v2596_v10, %s2486_s16 }
 0x159   : > { %977 = vrot.lane.b32.xlu1 %v2598_v12, %s2486_s16  ;;  %1038 = vrot.lane.b32.xlu0 %v2596_v10, %s2487_s19 }
 0x15d   : > { %1040 = vrot.lane.b32.xlu1 %v2598_v12, %s2487_s19  ;;  %1132 = vrot.lane.b32.xlu0 %v2596_v10, %s2499_s24 }
 0x161   : > { %1134 = vrot.lane.b32.xlu1 %v2598_v12, %s2499_s24  ;;  %1195 = vrot.lane.b32.xlu0 %v2596_v10, %s2500_s25 }
 0x163   : > { %v1491_v25 = vpop.permute.xlu1 %1490  ;;  %v1432_v26 = vpop.permute.xlu0 %1431 }
 0x165   : > { %1197 = vrot.lane.b32.xlu1 %v2598_v12, %s2500_s25  ;;  %1101 = vrot.lane.b32.xlu0 %v2596_v10, %s2501_s15 }
 0x167   : > { %v1403_v30 = vpop.permute.xlu1 %1402  ;;  %v1493_v31 = vpop.permute.xlu0 %1492 }
 0x168   : > { %v1494_v32 = vsel %vm843_vm2, %v1491_v25, %v1493_v31  ;;  %v1495_v33 = vsel %vm843_vm2, %v1493_v31, %v1491_v25  ;;  %v1565_v25 = vrot.slane %v2309_v15, %v2687_v22  ;;  %v2313_v31 = vld [vmem:[%s3148_s10 + $0x22] ss:$8 sm:$0x3] }
 0x169   : > { %v1508_v35 = vmul.f32 %v1501_v27, %v1495_v33  ;;  %v1509_v36 = vmul.f32 %v1505_v28, %v1494_v32  ;;  %1103 = vrot.lane.b32.xlu1 %v2598_v12, %s2501_s15  ;;  %1164 = vrot.lane.b32.xlu0 %v2596_v10, %s2502_s22 }
 0x16b   : > { %v2384_v39 = vpack.c.bf16 %v1509_v36, %v1508_v35  ;;  %v1462_v40 = vpop.permute.xlu1 %1461  ;;  %v1405_v41 = vpop.permute.xlu0 %1404 }
 0x16c   : > { %v1406_v42 = vsel %vm686_vm3, %v1403_v30, %v1405_v41  ;;  %v1407_v43 = vsel %vm686_vm3, %v1405_v41, %v1403_v30  ;;  %v1628_v41 = vrot.slane %v2313_v31, %v2689_v23 }
 0x16d   : > { %v1517_v46 = vrot.slane %v2384_v39, 6  ;;  %v1420_v47 = vmul.f32 %v1413_v34, %v1407_v43  ;;  %v1421_v48 = vmul.f32 %v1417_v37, %v1406_v42  ;;  %1166 = vrot.lane.b32.xlu1 %v2598_v12, %s2502_s22  ;;  %1227 = vrot.lane.b32.xlu0 %v2596_v10, %s2503_s14  ;;  %v1624_v37 = vrot.slane %v2313_v31, %v2687_v22 }
 0x16f   : > { %1519 = vst [vmem:[#allocation3 + $0x8] sm:$0xcc] %v1517_v46  ;;  %v2381_v51 = vpack.c.bf16 %v1421_v48, %v1420_v47  ;;  %v1525_v52 = vpop.permute.xlu1 %1524  ;;  %v1464_v53 = vpop.permute.xlu0 %1463 }
 0x170   : > { %v1465_v55 = vsel %vm749_vm4, %v1462_v40, %v1464_v53  ;;  %v1466_v56 = vsel %vm749_vm4, %v1464_v53, %v1462_v40 }
 0x171   : > { %1430 = vst [vmem:[#allocation3] sm:$0x33] %v2381_v51  ;;  %v1479_v59 = vmul.f32 %v1472_v44, %v1466_v56  ;;  %v1480_v60 = vmul.f32 %v1476_v49, %v1465_v55  ;;  %1229 = vrot.lane.b32.xlu1 %v2598_v12, %s2503_s14 }
 0x173   : > { %v2383_v63 = vpack.c.bf16 %v1480_v60, %v1479_v59  ;;  %v1434_v1 = vpop.permute.xlu1 %1433  ;;  %v1527_v2 = vpop.permute.xlu0 %1526 }
 0x174   : > { %v1435_v5 = vsel %vm717_vm5, %v1432_v26, %v1434_v1  ;;  %v1436_v7 = vsel %vm717_vm5, %v1434_v1, %v1432_v26  ;;  %v1528_v9 = vsel %vm884_vm6, %v1525_v52, %v1527_v2  ;;  %v1529_v10 = vsel %vm884_vm6, %v1527_v2, %v1525_v52  ;;  %v1642_v1 = vld [vmem:[%s3143_s5] sm:$0x3] }
 0x175   : > { %1489 = vst [vmem:[#allocation3 + $0x8] sm:$0x33] %v2383_v63  ;;  %v1449_v11 = vmul.f32 %v1442_v54, %v1436_v7  ;;  %v1450_v12 = vmul.f32 %v1446_v57, %v1435_v5  ;;  %v1542_v13 = vmul.f32 %v1535_v61, %v1528_v9  ;;  %v1543_v14 = vmul.f32 %v1539_v62, %v1529_v10  ;;  %v2235_v62 = vld [vmem:[%s3148_s10 + $0x1] ss:$8 sm:$0x3] }
 0x176   : > { %v1569_v26 = vrot.slane %v2309_v15, %v2689_v23  ;;  %v537_v2 = vrot.slane %v2235_v62, %v2687_v22  ;;  %v2239_v5 = vld [vmem:[%s3148_s10 + $0x3] ss:$8 sm:$0x3]  ;;  %v501_v15 = vld [vmem:[%s3148_s10] ss:$8 sm:$0x3] }
 0x177   : > { %v2382_v16 = vpack.c.bf16 %v1450_v12, %v1449_v11  ;;  %v2385_v17 = vpack.c.bf16 %v1543_v14, %v1542_v13  ;;  %v1584_v18 = vpop.permute.xlu1 %1583  ;;  %v1586_v19 = vpop.permute.xlu0 %1585  ;;  %v600_v13 = vrot.slane %v2239_v5, %v2687_v22  ;;  %v604_v14 = vrot.slane %v2239_v5, %v2689_v23 }
 0x178   : > { %v1587_v20 = vsel %vm1010_vm7, %v1584_v18, %v1586_v19  ;;  %v1588_v24 = vsel %vm1010_vm7, %v1586_v19, %v1584_v18 }
 0x179   : > { %v1458_v27 = vrot.slane %v2382_v16, 6  ;;  %v1551_v28 = vrot.slane %v2385_v17, 6  ;;  %v1601_v29 = vmul.f32 %v1594_v3, %v1587_v20  ;;  %v1602_v30 = vmul.f32 %v1598_v4, %v1588_v24 }
 0x17a   : > { %v541_v3 = vrot.slane %v2235_v62, %v2689_v23 }
 0x17b   : > { %1460 = vst [vmem:[#allocation3] sm:$0xcc] %v1458_v27  ;;  %1553 = vst [vmem:[#allocation3 + $0x10] sm:$0xcc] %v1551_v28  ;;  %v2387_v32 = vpack.c.bf16 %v1602_v30, %v1601_v29  ;;  %v1555_v33 = vpop.permute.xlu1 %1554  ;;  %v1557_v34 = vpop.permute.xlu0 %1556  ;;  %v510_v27 = vrot.slane %v501_v15, %v2689_v23 }
 0x17c   : > { %v1558_v35 = vsel %vm979_vm8, %v1555_v33, %v1557_v34  ;;  %v1559_v36 = vsel %vm979_vm8, %v1557_v34, %v1555_v33  ;;  %v2237_v28 = vld [vmem:[%s3148_s10 + $0x2] ss:$8 sm:$0x3] }
 0x17d   : > { %v1610_v38 = vrot.slane %v2387_v32, 6  ;;  %v1572_v39 = vmul.f32 %v1565_v25, %v1558_v35  ;;  %v1573_v40 = vmul.f32 %v1569_v26, %v1559_v36  ;;  %v569_v34 = vrot.slane %v2237_v28, %v2687_v22 }
 0x17f   : > { %1612 = vst [vmem:[#allocation3 + $0x18] sm:$0xcc] %v1610_v38  ;;  %v2386_v42 = vpack.c.bf16 %v1573_v40, %v1572_v39  ;;  %v1614_v43 = vpop.permute.xlu1 %1613  ;;  %v1616_v44 = vpop.permute.xlu0 %1615  ;;  %v573_v38 = vrot.slane %v2237_v28, %v2689_v23  ;;  %v2243_v40 = vld [vmem:[%s3148_s10 + $0x5] ss:$8 sm:$0x3] }
 0x180   : > { %v1617_v45 = vsel %vm1042_vm9, %v1614_v43, %v1616_v44  ;;  %v1618_v46 = vsel %vm1042_vm9, %v1616_v44, %v1614_v43 }
 0x181   : > { %1582 = vst [vmem:[#allocation3 + $0x18] sm:$0x33] %v2386_v42  ;;  %v1631_v47 = vmul.f32 %v1624_v37, %v1617_v45  ;;  %v1632_v48 = vmul.f32 %v1628_v41, %v1618_v46 }
 0x182   : > { %v2434_v49 = vld [vmem:[#allocation3] ss:$8 sps:$4 sm:$0xff]   ;;  %v2436_v50 = vld [vmem:[#allocation3 + $0x4] ss:$8 sps:$4 sm:$0xff]  }
 0x183   : > { %v2388_v51 = vpack.c.bf16 %v1632_v48, %v1631_v47  ;;  %v525_v52 = vpop.permute.xlu0 %524  ;;  %1689 = vmatprep.subr.bf16.mxu0 %v2436_v50  ;;  %v663_v47 = vrot.slane %v2243_v40, %v2687_v22  ;;  %v667_v48 = vrot.slane %v2243_v40, %v2689_v23  ;;  %v2247_v50 = vld [vmem:[%s3148_s10 + $0x7] ss:$8 sm:$0x3] }
 0x184   : > { %1690 = vmatpush1.bf16.msra.mxu0 %v2434_v49 }
 0x185   : > { %1641 = vst [vmem:[#allocation3 + $0x20] sm:$0x33] %v2388_v51 }
 0x187   : > { %v588_v53 = vpop.permute.xlu0 %587 }
 0x188   : > { %v2438_v54 = vld [vmem:[#allocation3 + $0x10] ss:$8 sps:$4 sm:$0xff]   ;;  %v2440_v55 = vld [vmem:[#allocation3 + $0x14] ss:$8 sps:$4 sm:$0xff]  }
 0x189   : > { %1691 = vmatprep.subr.bf16.mxu0 %v2440_v55 }
 0x18a   : > { %1692 = vmatpush1.bf16.msra.mxu0 %v2438_v54 }
 0x18b   : > { %v493_v56 = vpop.permute.xlu0 %492 }
 0x18c   : > { %v1647_v57 = vld [vmem:[#allocation3 + $0x20] sm:$0x33] }
 0x18d   : > { %v2320_v58 = vcombine.high %v1647_v57, %v1647_v57  ;;  %v2319_v59 = vcombine.low %v1647_v57, %v1647_v57  ;;  %v726_v57 = vrot.slane %v2247_v50, %v2687_v22 }
 0x18f   : > { %v557_v60 = vpop.permute.xlu0 %556  ;;  %2321 = vmatprep.subr.msk.bf16.mxu0 %vm434_vm0, %v2320_v58  ;;  %v1684_v61 = vsel %vm434_vm0, %v2319_v59, 0  ;;  %v730_v58 = vrot.slane %v2247_v50, %v2689_v23  ;;  %v2241_v59 = vld [vmem:[%s3148_s10 + $0x4] ss:$8 sm:$0x3] }
 0x190   : > { %v2783_v63 = vpop.permute.xlu1 %1651  ;;  %1694 = vmatpush1.bf16.msra.mxu0 %v1684_v61 }
 0x193   : > { %v651_v4 = vpop.permute.xlu0 %650  ;;  %2322 = vmatmul.mubr.msk.bf16.vlgmr.msra.gmra.mrb[8].mxu0 %vm1679_vm10, %v1642_v1 }
 0x194   : > { %v527_v7 = vpop.permute.xlu1 %526  ;;  %2053 = vmatprep.mubr.bf16.mxu0 %v2479_v0  ;;  %v506_v0 = vrot.slane %v501_v15, %v2687_v22 }
 0x195   : > { %v529_v9 = vsel %vm528_vm11, %v525_v52, %v527_v7  ;;  %v530_v10 = vsel %vm528_vm11, %v527_v7, %v525_v52  ;;  %vm780_vm11 = vcmp.lt.s32.totalorder %v2685_v21, 14 }
 0x196   : > { %v544_v11 = vmul.f32 %v537_v2, %v530_v10  ;;  %v545_v12 = vmul.f32 %v541_v3, %v529_v9  ;;  %v632_v3 = vrot.slane %v2241_v59, %v2687_v22  ;;  %v636_v9 = vrot.slane %v2241_v59, %v2689_v23  ;;  %v2245_v10 = vld [vmem:[%s3148_s10 + $0x6] ss:$8 sm:$0x3] }
 0x197   : > { %v714_v16 = vpop.permute.xlu0 %713 }
 0x198   : > { %v2357_v17 = vpack.c.bf16 %v545_v12, %v544_v11  ;;  %v590_v18 = vpop.permute.xlu1 %589 }
 0x199   : > { %v592_v19 = vsel %vm591_vm12, %v588_v53, %v590_v18  ;;  %v593_v20 = vsel %vm591_vm12, %v590_v18, %v588_v53  ;;  %vm812_vm12 = vcmp.lt.s32.totalorder %v2685_v21, 2 }
 0x19a   : > { %v553_v24 = vrot.slane %v2357_v17, 6  ;;  %v607_v25 = vmul.f32 %v600_v13, %v593_v20  ;;  %v608_v26 = vmul.f32 %v604_v14, %v592_v19 }
 0x19b   : > { %v620_v29 = vpop.permute.xlu0 %619 }
 0x19c   : > { %555 = vst [vmem:[#allocation2] sm:$0xcc] %v553_v24  ;;  %v2359_v30 = vpack.c.bf16 %v608_v26, %v607_v25  ;;  %v495_v31 = vpop.permute.xlu1 %494  ;;  %v699_v24 = vrot.slane %v2245_v10, %v2689_v23  ;;  %v2251_v26 = vld [vmem:[%s3148_s10 + $0x11] ss:$8 sm:$0x3] }
 0x19d   : > { %v499_v32 = vsel %vm498_vm13, %v493_v56, %v495_v31  ;;  %v500_v33 = vsel %vm498_vm13, %v495_v31, %v493_v56  ;;  %vm947_vm13 = vcmp.lt.s32.totalorder %v2685_v21, 114 }
 0x19e   : > { %v616_v35 = vrot.slane %v2359_v30, 6  ;;  %v513_v36 = vmul.f32 %v506_v0, %v500_v33  ;;  %v514_v37 = vmul.f32 %v510_v27, %v499_v32  ;;  %v789_v33 = vrot.slane %v2251_v26, %v2687_v22 }
 0x19f   : > { %v683_v39 = vpop.permute.xlu0 %682 }
 0x1a0   : > { %618 = vst [vmem:[#allocation2 + $0x8] sm:$0xcc] %v616_v35  ;;  %v2356_v41 = vpack.c.bf16 %v514_v37, %v513_v36  ;;  %v559_v42 = vpop.permute.xlu1 %558  ;;  %v2255_v36 = vld [vmem:[%s3148_s10 + $0x13] ss:$8 sm:$0x3] }
 0x1a1   : > { %v561_v43 = vsel %vm560_vm14, %v557_v60, %v559_v42  ;;  %v562_v44 = vsel %vm560_vm14, %v559_v42, %v557_v60  ;;  %vm916_vm14 = vcmp.lt.s32.totalorder %v2685_v21, 126 }
 0x1a2   : > { %523 = vst [vmem:[#allocation2] sm:$0x33] %v2356_v41  ;;  %v576_v45 = vmul.f32 %v569_v34, %v562_v44  ;;  %v577_v46 = vmul.f32 %v573_v38, %v561_v43  ;;  %v793_v34 = vrot.slane %v2251_v26, %v2689_v23  ;;  %v852_v43 = vrot.slane %v2255_v36, %v2687_v22 }
 0x1a3   : > { %v777_v49 = vpop.permute.xlu0 %776  ;;  %v856_v44 = vrot.slane %v2255_v36, %v2689_v23 }
 0x1a4   : > { %v2358_v51 = vpack.c.bf16 %v577_v46, %v576_v45  ;;  %v653_v52 = vpop.permute.xlu1 %652  ;;  %v2249_v45 = vld [vmem:[%s3148_s10 + $0x10] ss:$8 sm:$0x3] }
 0x1a5   : > { %v655_v53 = vsel %vm654_vm15, %v651_v4, %v653_v52  ;;  %v656_v54 = vsel %vm654_vm15, %v653_v52, %v651_v4  ;;  %vm1073_vm15 = vcmp.lt.s32.totalorder %v2685_v21, 110 }
 0x1a6   : > { %586 = vst [vmem:[#allocation2 + $0x8] sm:$0x33] %v2358_v51  ;;  %v670_v55 = vmul.f32 %v663_v47, %v656_v54  ;;  %v671_v56 = vmul.f32 %v667_v48, %v655_v53  ;;  %v758_v51 = vrot.slane %v2249_v45, %v2687_v22 }
 0x1a7   : > { %v840_v60 = vpop.permute.xlu0 %839 }
 0x1a8   : > { %v2361_v61 = vpack.c.bf16 %v671_v56, %v670_v55  ;;  %v716_v62 = vpop.permute.xlu1 %715  ;;  %v762_v55 = vrot.slane %v2249_v45, %v2689_v23  ;;  %v2253_v56 = vld [vmem:[%s3148_s10 + $0x12] ss:$8 sm:$0x3] }
 0x1a9   : > { %v718_v1 = vsel %vm717_vm5, %v714_v16, %v716_v62  ;;  %v719_v2 = vsel %vm717_vm5, %v716_v62, %v714_v16  ;;  %v695_v16 = vrot.slane %v2245_v10, %v2687_v22  ;;  %v821_v62 = vrot.slane %v2253_v56, %v2687_v22 }
 0x1aa   : > { %v679_v4 = vrot.slane %v2361_v61, 6  ;;  %v733_v5 = vmul.f32 %v726_v57, %v719_v2  ;;  %v734_v7 = vmul.f32 %v730_v58, %v718_v1 }
 0x1ab   : > { %v746_v11 = vpop.permute.xlu0 %745 }
 0x1ac   : > { %681 = vst [vmem:[#allocation2 + $0x10] sm:$0xcc] %v679_v4  ;;  %v2363_v12 = vpack.c.bf16 %v734_v7, %v733_v5  ;;  %v622_v13 = vpop.permute.xlu1 %621  ;;  %v825_v7 = vrot.slane %v2253_v56, %v2689_v23 }
 0x1ad   : > { %v624_v14 = vsel %vm623_vm1, %v620_v29, %v622_v13  ;;  %v625_v15 = vsel %vm623_vm1, %v622_v13, %v620_v29  ;;  %v2443_v17 = vld [vmem:[#allocation2 + $0x4] ss:$8 sps:$4 sm:$0xff]   ;;  %v2445_v18 = vld [vmem:[#allocation2] ss:$8 sps:$4 sm:$0xff]   ;;  %vm1136_vm1 = vcmp.lt.s32.totalorder %v2685_v21, 97 }
 0x1ae   : > { %v742_v19 = vrot.slane %v2363_v12, 6  ;;  %v639_v20 = vmul.f32 %v632_v3, %v625_v15  ;;  %v640_v0 = vmul.f32 %v636_v9, %v624_v14  ;;  %1353 = vmatprep.subr.bf16.mxu1 %v2443_v17  ;;  %v2258_v9 = vld [vmem:[%s3148_s10 + $0x15] ss:$8 sm:$0x3] }
 0x1af   : > { %v809_v25 = vpop.permute.xlu0 %808  ;;  %1354 = vmatpush1.bf16.msra.mxu1 %v2445_v18  ;;  %v893_v17 = vrot.slane %v2258_v9, %v2687_v22  ;;  %v897_v18 = vrot.slane %v2258_v9, %v2689_v23 }
 0x1b0   : > { %744 = vst [vmem:[#allocation2 + $0x18] sm:$0xcc] %v742_v19  ;;  %v2360_v27 = vpack.c.bf16 %v640_v0, %v639_v20  ;;  %v685_v28 = vpop.permute.xlu1 %684  ;;  %v2262_v19 = vld [vmem:[%s3148_s10 + $0x17] ss:$8 sm:$0x3] }
 0x1b1   : > { %v687_v29 = vsel %vm686_vm3, %v683_v39, %v685_v28  ;;  %v688_v30 = vsel %vm686_vm3, %v685_v28, %v683_v39 }
 0x1b2   : > { %649 = vst [vmem:[#allocation2 + $0x10] sm:$0x33] %v2360_v27  ;;  %v702_v31 = vmul.f32 %v695_v16, %v688_v30  ;;  %v703_v32 = vmul.f32 %v699_v24, %v687_v29  ;;  %v956_v29 = vrot.slane %v2262_v19, %v2687_v22  ;;  %v960_v30 = vrot.slane %v2262_v19, %v2689_v23 }
 0x1b3   : > { %v881_v35 = vpop.permute.xlu0 %880 }
 0x1b4   : > { %v2362_v37 = vpack.c.bf16 %v703_v32, %v702_v31  ;;  %v779_v38 = vpop.permute.xlu1 %778  ;;  %v2260_v31 = vld [vmem:[%s3148_s10 + $0x16] ss:$8 sm:$0x3] }
 0x1b5   : > { %v781_v40 = vsel %vm780_vm11, %v777_v49, %v779_v38  ;;  %v782_v41 = vsel %vm780_vm11, %v779_v38, %v777_v49  ;;  %vm1199_vm11 = vcmp.lt.s32.totalorder %v2685_v21, 95 }
 0x1b6   : > { %712 = vst [vmem:[#allocation2 + $0x18] sm:$0x33] %v2362_v37  ;;  %v796_v39 = vmul.f32 %v789_v33, %v782_v41  ;;  %v797_v42 = vmul.f32 %v793_v34, %v781_v40  ;;  %v929_v41 = vrot.slane %v2260_v31, %v2689_v23 }
 0x1b7   : > { %v944_v46 = vpop.permute.xlu0 %943 }
 0x1b8   : > { %v2365_v47 = vpack.c.bf16 %v797_v42, %v796_v39  ;;  %v842_v48 = vpop.permute.xlu1 %841  ;;  %v2266_v39 = vld [vmem:[%s3148_s10 + $0x21] ss:$8 sm:$0x3] }
 0x1b9   : > { %v844_v50 = vsel %vm843_vm2, %v840_v60, %v842_v48  ;;  %v845_v49 = vsel %vm843_vm2, %v842_v48, %v840_v60 }
 0x1ba   : > { %v805_v52 = vrot.slane %v2365_v47, 6  ;;  %v859_v53 = vmul.f32 %v852_v43, %v845_v49  ;;  %v860_v54 = vmul.f32 %v856_v44, %v844_v50 }
 0x1bb   : > { %v913_v57 = vpop.permute.xlu0 %912 }
 0x1bc   : > { %807 = vst [vmem:[#allocation2 + $0x20] sm:$0xcc] %v805_v52  ;;  %v2367_v58 = vpack.c.bf16 %v860_v54, %v859_v53  ;;  %v748_v59 = vpop.permute.xlu1 %747  ;;  %v1023_v53 = vrot.slane %v2266_v39, %v2689_v23  ;;  %v2270_v54 = vld [vmem:[%s3148_s10 + $0x23] ss:$8 sm:$0x3] }
 0x1bd   : > { %v750_v61 = vsel %vm749_vm4, %v746_v11, %v748_v59  ;;  %v751_v60 = vsel %vm749_vm4, %v748_v59, %v746_v11  ;;  %v2446_v1 = vld [vmem:[#allocation2 + $0x14] ss:$8 sps:$4 sm:$0xff]   ;;  %v2448_v2 = vld [vmem:[#allocation2 + $0x10] ss:$8 sps:$4 sm:$0xff]  }
 0x1be   : > { %v868_v3 = vrot.slane %v2367_v58, 6  ;;  %v765_v4 = vmul.f32 %v758_v51, %v751_v60  ;;  %v766_v5 = vmul.f32 %v762_v55, %v750_v61  ;;  %1355 = vmatprep.subr.bf16.mxu1 %v2446_v1  ;;  %v1086_v1 = vrot.slane %v2270_v54, %v2689_v23 }
 0x1bf   : > { %v1007_v12 = vpop.permute.xlu0 %1006  ;;  %1356 = vmatpush1.bf16.msra.mxu1 %v2448_v2  ;;  %v2264_v2 = vld [vmem:[%s3148_s10 + $0x20] ss:$8 sm:$0x3] }
 0x1c0   : > { %870 = vst [vmem:[#allocation2 + $0x28] sm:$0xcc] %v868_v3  ;;  %v2364_v10 = vpack.c.bf16 %v766_v5, %v765_v4  ;;  %v811_v11 = vpop.permute.xlu1 %810  ;;  %v988_v9 = vrot.slane %v2264_v2, %v2687_v22 }
 0x1c1   : > { %v813_v13 = vsel %vm812_vm12, %v809_v25, %v811_v11  ;;  %v814_v14 = vsel %vm812_vm12, %v811_v11, %v809_v25  ;;  %vm1105_vm12 = vcmp.lt.s32.totalorder %v2685_v21, 98 }
 0x1c2   : > { %775 = vst [vmem:[#allocation2 + $0x20] sm:$0x33] %v2364_v10  ;;  %v828_v15 = vmul.f32 %v821_v62, %v814_v14  ;;  %v829_v16 = vmul.f32 %v825_v7, %v813_v13  ;;  %v1082_v62 = vrot.slane %v2270_v54, %v2687_v22  ;;  %v992_v13 = vrot.slane %v2264_v2, %v2689_v23  ;;  %v2268_v14 = vld [vmem:[%s3148_s10 + $0x22] ss:$8 sm:$0x3] }
 0x1c3   : > { %v1070_v25 = vpop.permute.xlu0 %1069 }
 0x1c4   : > { %v2366_v20 = vpack.c.bf16 %v829_v16, %v828_v15  ;;  %v883_v0 = vpop.permute.xlu1 %882 }
 0x1c5   : > { %v885_v24 = vsel %vm884_vm6, %v881_v35, %v883_v0  ;;  %v886_v26 = vsel %vm884_vm6, %v883_v0, %v881_v35  ;;  %v925_v35 = vrot.slane %v2260_v31, %v2687_v22 }
 0x1c6   : > { %838 = vst [vmem:[#allocation2 + $0x28] sm:$0x33] %v2366_v20  ;;  %v900_v27 = vmul.f32 %v893_v17, %v885_v24  ;;  %v901_v28 = vmul.f32 %v897_v18, %v886_v26  ;;  %v1051_v20 = vrot.slane %v2268_v14, %v2687_v22 }
 0x1c7   : > { %v976_v42 = vpop.permute.xlu0 %975 }
 0x1c8   : > { %v2369_v32 = vpack.c.bf16 %v901_v28, %v900_v27  ;;  %v946_v33 = vpop.permute.xlu1 %945  ;;  %v1055_v28 = vrot.slane %v2268_v14, %v2689_v23 }
 0x1c9   : > { %v948_v34 = vsel %vm947_vm13, %v944_v46, %v946_v33  ;;  %v949_v36 = vsel %vm947_vm13, %v946_v33, %v944_v46  ;;  %v1019_v46 = vrot.slane %v2266_v39, %v2687_v22  ;;  %vm1168_vm13 = vcmp.lt.s32.totalorder %v2685_v21, 96 }
 0x1ca   : > { %v909_v37 = vrot.slane %v2369_v32, 6  ;;  %v963_v38 = vmul.f32 %v956_v29, %v948_v34  ;;  %v964_v40 = vmul.f32 %v960_v30, %v949_v36  ;;  %v2274_v29 = vld [vmem:[%s3148_s10 + $0x25] ss:$8 sm:$0x3]  ;;  %v2928_v30 = vpop.f32.mrb[4].mxu0 }
 0x1cb   : > { %v1039_v59 = vpop.permute.xlu0 %1038  ;;  %v2930_v33 = vpop.f32.mrb[5].mxu0  ;;  %v1149_v39 = vrot.slane %v2274_v29, %v2689_v23 }
 0x1cc   : > { %911 = vst [vmem:[#allocation2 + $0x30] sm:$0xcc] %v909_v37  ;;  %v2371_v43 = vpack.c.bf16 %v964_v40, %v963_v38  ;;  %v915_v44 = vpop.permute.xlu1 %914 }
 0x1cd   : > { %v917_v45 = vsel %vm916_vm14, %v913_v57, %v915_v44  ;;  %v918_v47 = vsel %vm916_vm14, %v915_v44, %v913_v57  ;;  %v2449_v48 = vld [vmem:[#allocation2 + $0x24] ss:$8 sps:$4 sm:$0xff]   ;;  %v2451_v50 = vld [vmem:[#allocation2 + $0x20] ss:$8 sps:$4 sm:$0xff]   ;;  %vm1231_vm14 = vcmp.lt.s32.totalorder %v2685_v21, 94 }
 0x1ce   : > { %v972_v49 = vrot.slane %v2371_v43, 6  ;;  %v932_v51 = vmul.f32 %v925_v35, %v917_v45  ;;  %v933_v52 = vmul.f32 %v929_v41, %v918_v47  ;;  %1357 = vmatprep.subr.bf16.mxu1 %v2449_v48  ;;  %v489_v35 = vpop.f32.mrb[6].mxu0  ;;  %v1145_v41 = vrot.slane %v2274_v29, %v2687_v22  ;;  %v2278_v43 = vld [vmem:[%s3148_s10 + $0x27] ss:$8 sm:$0x3] }
 0x1cf   : > { %1358 = vmatpush1.bf16.msra.mxu1 %v2451_v50  ;;  %v1133_v15 = vpop.permute.xlu0 %1132 }
 0x1d0   : > { %974 = vst [vmem:[#allocation2 + $0x38] sm:$0xcc] %v972_v49  ;;  %v2370_v55 = vpack.c.bf16 %v933_v52, %v932_v51  ;;  %v1009_v56 = vpop.permute.xlu1 %1008  ;;  %v1208_v49 = vrot.slane %v2278_v43, %v2687_v22  ;;  %v1212_v51 = vrot.slane %v2278_v43, %v2689_v23  ;;  %v2272_v52 = vld [vmem:[%s3148_s10 + $0x24] ss:$8 sm:$0x3] }
 0x1d1   : > { %v1011_v57 = vsel %vm1010_vm7, %v1007_v12, %v1009_v56  ;;  %v1012_v58 = vsel %vm1010_vm7, %v1009_v56, %v1007_v12  ;;  %v1258_v43 = vld [vmem:[%s3141_s3] sm:$0xf] }
 0x1d2   : > { %942 = vst [vmem:[#allocation2 + $0x38] sm:$0x33] %v2370_v55  ;;  %v1026_v61 = vmul.f32 %v1019_v46, %v1011_v57  ;;  %v1027_v60 = vmul.f32 %v1023_v53, %v1012_v58  ;;  %v1114_v58 = vrot.slane %v2272_v52, %v2687_v22 }
 0x1d3   : > { %v1196_v37 = vpop.permute.xlu0 %1195 }
 0x1d4   : > { %v2373_v3 = vpack.c.bf16 %v1027_v60, %v1026_v61  ;;  %v1072_v4 = vpop.permute.xlu1 %1071 }
 0x1d5   : > { %v1074_v5 = vsel %vm1073_vm15, %v1070_v25, %v1072_v4  ;;  %v1075_v7 = vsel %vm1073_vm15, %v1072_v4, %v1070_v25  ;;  %vm1343_vm15 = vcmask 818176  }
 0x1d6   : > { %v1035_v10 = vrot.slane %v2373_v3, 6  ;;  %v1089_v12 = vmul.f32 %v1082_v62, %v1074_v5  ;;  %v1090_v11 = vmul.f32 %v1086_v1, %v1075_v7  ;;  %v1118_v62 = vrot.slane %v2272_v52, %v2689_v23  ;;  %v2276_v1 = vld [vmem:[%s3148_s10 + $0x26] ss:$8 sm:$0x3] }
 0x1d7   : > { %v1102_v53 = vpop.permute.xlu0 %1101  ;;  %v1177_v7 = vrot.slane %v2276_v1, %v2687_v22 }
 0x1d8   : > { %1037 = vst [vmem:[#allocation2 + $0x40] sm:$0xcc] %v1035_v10  ;;  %v2375_v16 = vpack.c.bf16 %v1090_v11, %v1089_v12  ;;  %v978_v17 = vpop.permute.xlu1 %977 }
 0x1d9   : > { %v980_v18 = vsel %vm979_vm8, %v976_v42, %v978_v17  ;;  %v981_v19 = vsel %vm979_vm8, %v978_v17, %v976_v42  ;;  %v2452_v0 = vld [vmem:[#allocation2 + $0x34] ss:$8 sps:$4 sm:$0xff]   ;;  %v2454_v24 = vld [vmem:[#allocation2 + $0x30] ss:$8 sps:$4 sm:$0xff]   ;;  %v490_v42 = vpop.f32.mrb[7].mxu0 }
 0x1da   : > { %v1098_v26 = vrot.slane %v2375_v16, 6  ;;  %v995_v25 = vmul.f32 %v988_v9, %v980_v18  ;;  %v996_v27 = vmul.f32 %v992_v13, %v981_v19  ;;  %1359 = vmatprep.subr.bf16.mxu1 %v2452_v0  ;;  %v2280_v16 = vld [vmem:[%s3148_s10 + $0x30] ss:$8 sm:$0x3] }
 0x1db   : > { %1360 = vmatpush1.bf16.msra.mxu1 %v2454_v24  ;;  %v1165_v12 = vpop.permute.xlu0 %1164 }
 0x1dc   : > { %1100 = vst [vmem:[#allocation2 + $0x48] sm:$0xcc] %v1098_v26  ;;  %v2372_v31 = vpack.c.bf16 %v996_v27, %v995_v25  ;;  %v1041_v32 = vpop.permute.xlu1 %1040  ;;  %v1240_v26 = vrot.slane %v2280_v16, %v2687_v22  ;;  %v1244_v25 = vrot.slane %v2280_v16, %v2689_v23 }
 0x1dd   : > { %v1043_v34 = vsel %vm1042_vm9, %v1039_v59, %v1041_v32  ;;  %v1044_v36 = vsel %vm1042_vm9, %v1041_v32, %v1039_v59 }
 0x1de   : > { %1005 = vst [vmem:[#allocation2 + $0x40] sm:$0x33] %v2372_v31  ;;  %v1058_v38 = vmul.f32 %v1051_v20, %v1043_v34  ;;  %v1059_v40 = vmul.f32 %v1055_v28, %v1044_v36 }
 0x1df   : > { %v1228_v27 = vpop.permute.xlu0 %1227 }
 0x1e0   : > { %v2374_v44 = vpack.c.bf16 %v1059_v40, %v1058_v38  ;;  %v1135_v45 = vpop.permute.xlu1 %1134 }
 0x1e1   : > { %v1137_v47 = vsel %vm1136_vm1, %v1133_v15, %v1135_v45  ;;  %v1138_v46 = vsel %vm1136_vm1, %v1135_v45, %v1133_v15  ;;  %v1181_v15 = vrot.slane %v2276_v1, %v2689_v23  ;;  %v2323_v1 = vld [vmem:[%s3148_s10 + $0x6] ss:$8 sm:$0x3] }
 0x1e2   : > { %1068 = vst [vmem:[#allocation2 + $0x48] sm:$0x33] %v2374_v44  ;;  %v1152_v48 = vmul.f32 %v1145_v41, %v1137_v47  ;;  %v1153_v50 = vmul.f32 %v1149_v39, %v1138_v46 }
 0x1e4   : > { %v2377_v54 = vpack.c.bf16 %v1153_v50, %v1152_v48  ;;  %v1198_v55 = vpop.permute.xlu1 %1197 }
 0x1e5   : > { %v1200_v56 = vsel %vm1199_vm11, %v1196_v37, %v1198_v55  ;;  %v1201_v57 = vsel %vm1199_vm11, %v1198_v55, %v1196_v37  ;;  %v2329_v55 = vld [vmem:[%s3148_s10 + $0x13] ss:$8 sm:$0x3] }
 0x1e6   : > { %v1161_v59 = vrot.slane %v2377_v54, 6  ;;  %v1215_v61 = vmul.f32 %v1208_v49, %v1200_v56  ;;  %v1216_v60 = vmul.f32 %v1212_v51, %v1201_v57  ;;  %v2325_v51 = vld [vmem:[%s3148_s10 + $0x7] ss:$8 sm:$0x3] }
 0x1e7   : > { %v1770_v52 = vrot.slane %v2325_v51, %v2687_v22 }
 0x1e8   : > { %1163 = vst [vmem:[#allocation2 + $0x50] sm:$0xcc] %v1161_v59  ;;  %v2379_v2 = vpack.c.bf16 %v1216_v60, %v1215_v61  ;;  %v1104_v3 = vpop.permute.xlu1 %1103  ;;  %v1829_v60 = vrot.slane %v2329_v55, %v2687_v22 }
 0x1e9   : > { %v1106_v4 = vsel %vm1105_vm12, %v1102_v53, %v1104_v3  ;;  %v1107_v5 = vsel %vm1105_vm12, %v1104_v3, %v1102_v53  ;;  %v2455_v9 = vld [vmem:[#allocation2 + $0x44] ss:$8 sps:$4 sm:$0xff]   ;;  %v2457_v10 = vld [vmem:[#allocation2 + $0x40] ss:$8 sps:$4 sm:$0xff]   ;;  %v1774_v53 = vrot.slane %v2325_v51, %v2689_v23 }
 0x1ea   : > { %v1224_v11 = vrot.slane %v2379_v2, 6  ;;  %v1121_v13 = vmul.f32 %v1114_v58, %v1106_v4  ;;  %v1122_v14 = vmul.f32 %v1118_v62, %v1107_v5  ;;  %1361 = vmatprep.subr.bf16.mxu1 %v2455_v9  ;;  %v1833_v62 = vrot.slane %v2329_v55, %v2689_v23 }
 0x1eb   : > { %1362 = vmatpush1.bf16.msra.mxu1 %v2457_v10  ;;  %v1741_v9 = vrot.slane %v2323_v1, %v2687_v22 }
 0x1ec   : > { %1226 = vst [vmem:[#allocation2 + $0x58] sm:$0xcc] %v1224_v11  ;;  %v2376_v17 = vpack.c.bf16 %v1122_v14, %v1121_v13  ;;  %v1167_v18 = vpop.permute.xlu1 %1166  ;;  %v1745_v13 = vrot.slane %v2323_v1, %v2689_v23  ;;  %v2327_v14 = vld [vmem:[%s3148_s10 + $0x10] ss:$8 sm:$0x3] }
 0x1ed   : > { %v1169_v19 = vsel %vm1168_vm13, %v1165_v12, %v1167_v18  ;;  %v1170_v20 = vsel %vm1168_vm13, %v1167_v18, %v1165_v12 }
 0x1ee   : > { %1131 = vst [vmem:[#allocation2 + $0x50] sm:$0x33] %v2376_v17  ;;  %v1184_v0 = vmul.f32 %v1177_v7, %v1169_v19  ;;  %v1185_v24 = vmul.f32 %v1181_v15, %v1170_v20  ;;  %v1800_v20 = vrot.slane %v2327_v14, %v2687_v22 }
 0x1f0   : > { %v2378_v28 = vpack.c.bf16 %v1185_v24, %v1184_v0  ;;  %v1230_v29 = vpop.permute.xlu1 %1229 }
 0x1f1   : > { %v1232_v31 = vsel %vm1231_vm14, %v1228_v27, %v1230_v29  ;;  %v1233_v32 = vsel %vm1231_vm14, %v1230_v29, %v1228_v27 }
 0x1f2   : > { %1194 = vst [vmem:[#allocation2 + $0x58] sm:$0x33] %v2378_v28  ;;  %v1247_v34 = vmul.f32 %v1240_v26, %v1232_v31  ;;  %v1248_v36 = vmul.f32 %v1244_v25, %v1233_v32  ;;  %v1804_v25 = vrot.slane %v2327_v14, %v2689_v23  ;;  %v2332_v28 = vld [vmem:[%s3148_s10 + $0x15] ss:$8 sm:$0x3] }
 0x1f4   : > { %v2380_v35 = vpack.c.bf16 %v1248_v36, %v1247_v34 }
 0x1f6   : > { %1257 = vst [vmem:[#allocation2 + $0x60] sm:$0x33] %v2380_v35 }
 0x1f9   : > { %v2458_v37 = vld [vmem:[#allocation2 + $0x54] ss:$8 sps:$4 sm:$0xff]   ;;  %v2460_v38 = vld [vmem:[#allocation2 + $0x50] ss:$8 sps:$4 sm:$0xff]  }
 0x1fa   : > { %1363 = vmatprep.subr.bf16.mxu1 %v2458_v37  ;;  %v1868_v37 = vrot.slane %v2332_v28, %v2687_v22 }
 0x1fb   : > { %1364 = vmatpush1.bf16.msra.mxu1 %v2460_v38  ;;  %v1872_v38 = vrot.slane %v2332_v28, %v2689_v23 }
 0x1fd   : > { %v1271_v40 = vld [vmem:[#allocation2 + $0x60] sm:$0x33] }
 0x1fe   : > { %v2295_v41 = vcombine.high %v1271_v40, %v1271_v40  ;;  %v2294_v39 = vcombine.low %v1271_v40, %v1271_v40 }
 0x200   : > { %2296 = vmatprep.subr.msk.bf16.mxu1 %vm434_vm0, %v2295_v41  ;;  %v1348_v42 = vsel %vm434_vm0, %v2294_v39, 0  ;;  %v2336_v41 = vld [vmem:[%s3148_s10 + $0x21] ss:$8 sm:$0x3] }
 0x201   : > { %1366 = vmatpush1.bf16.msra.mxu1 %v1348_v42 }
 0x204   : > { %2297 = vmatmul.mubr.msk.bf16.vlgmr.msra.gmra.mrb[0].mxu1 %vm1343_vm15, %v1258_v43 }
 0x266   : > { %v1723_v44 = vpop.f32.mrb[8].mxu0 }
 0x267   : > { %v1724_v45 = vadd.f32 %v1723_v44, %v2783_v63  ;;  %v1725_v47 = vpop.f32.mrb[9].mxu0 }
 0x268   : > { %v1726_v46 = vadd.f32 %v1725_v47, %v2783_v63  ;;  %v1727_v48 = vpop.f32.mrb[10].mxu0  ;;  %v394_v63 = vld [vmem:[%s3140_s2 + $0x10] sm:$0xff] }
 0x269   : > { %v1728_v50 = vpop.f32.mrb[11].mxu0  ;;  %1759 = vrot.lane.b32.xlu0 %v1724_v45, %s2481_s28  ;;  %v1931_v48 = vrot.slane %v2336_v41, %v2689_v23 }
 0x26a   : > { %1761 = vrot.lane.b32.xlu1 %v1726_v46, %s2481_s28  ;;  %v2393_v49 = vpack.c.bf16 %v1726_v46, %v1724_v45  ;;  %v2334_v50 = vld [vmem:[%s3148_s10 + $0x20] ss:$8 sm:$0x3] }
 0x26c   : > { %1856 = vst [vmem:[#allocation4 + $0x10] sm:$0x33] %v2393_v49 }
 0x26d   : > { %1818 = vrot.lane.b32.xlu0 %v1724_v45, %s2480_s27 }
 0x26e   : > { %1820 = vrot.lane.b32.xlu1 %v1726_v46, %s2480_s27 }
 0x271   : > { %1730 = vrot.lane.b32.xlu0 %v1724_v45, %s2482_s29 }
 0x272   : > { %1732 = vrot.lane.b32.xlu1 %v1726_v46, %s2482_s29 }
 0x275   : > { %1789 = vrot.lane.b32.xlu0 %v1724_v45, %s2483_s30 }
 0x276   : > { %1791 = vrot.lane.b32.xlu1 %v1726_v46, %s2483_s30 }
 0x279   : > { %1857 = vrot.lane.b32.xlu0 %v1724_v45, %s2484_s12 }
 0x27a   : > { %1859 = vrot.lane.b32.xlu1 %v1726_v46, %s2484_s12 }
 0x27d   : > { %1916 = vrot.lane.b32.xlu0 %v1724_v45, %s2485_s13 }
 0x27e   : > { %1918 = vrot.lane.b32.xlu1 %v1726_v46, %s2485_s13 }
 0x281   : > { %1887 = vrot.lane.b32.xlu0 %v1724_v45, %s2486_s16 }
 0x282   : > { %1889 = vrot.lane.b32.xlu1 %v1726_v46, %s2486_s16 }
 0x285   : > { %1946 = vrot.lane.b32.xlu0 %v1724_v45, %s2487_s19 }
 0x286   : > { %1948 = vrot.lane.b32.xlu1 %v1726_v46, %s2487_s19  ;;  %v1927_v46 = vrot.slane %v2336_v41, %v2687_v22  ;;  %s2355_s19 = sshll.u32 %s3151_s18, 4 }
 0x287   : > { %s386_s21 = scalar_lea.vmem %s3149_s11, %s2355_s19 }
 0x289   : > { %407 = vperm.xlu0 %2431, %v394_v63  }
 0x2db   : > { %v1760_v54 = vpop.permute.xlu0 %1759 }
 0x2dc   : > { %v1762_v56 = vpop.permute.xlu1 %1761 }
 0x2dd   : > { %v1763_v57 = vsel %vm717_vm5, %v1760_v54, %v1762_v56  ;;  %v1764_v58 = vsel %vm717_vm5, %v1762_v56, %v1760_v54  ;;  %v1898_v54 = vrot.slane %v2334_v50, %v2687_v22 }
 0x2de   : > { %v1777_v59 = vmul.f32 %v1770_v52, %v1764_v58  ;;  %v1778_v61 = vmul.f32 %v1774_v53, %v1763_v57  ;;  %v1902_v58 = vrot.slane %v2334_v50, %v2689_v23 }
 0x2df   : > { %v1819_v2 = vpop.permute.xlu0 %1818 }
 0x2e0   : > { %v2390_v3 = vpack.c.bf16 %v1778_v61, %v1777_v59  ;;  %v1821_v4 = vpop.permute.xlu1 %1820  ;;  %v2338_v59 = vld [vmem:[%s3148_s10 + $0x22] ss:$8 sm:$0x3] }
 0x2e1   : > { %v1822_v5 = vsel %vm843_vm2, %v1819_v2, %v1821_v4  ;;  %v1823_v7 = vsel %vm843_vm2, %v1821_v4, %v1819_v2 }
 0x2e2   : > { %v1786_v10 = vrot.slane %v2390_v3, 6  ;;  %v1836_v12 = vmul.f32 %v1829_v60, %v1823_v7  ;;  %v1837_v11 = vmul.f32 %v1833_v62, %v1822_v5  ;;  %v1957_v3 = vrot.slane %v2338_v59, %v2687_v22 }
 0x2e3   : > { %v1731_v15 = vpop.permute.xlu0 %1730 }
 0x2e4   : > { %1788 = vst [vmem:[#allocation4] sm:$0xcc] %v1786_v10  ;;  %v2392_v16 = vpack.c.bf16 %v1837_v11, %v1836_v12  ;;  %v1733_v17 = vpop.permute.xlu1 %1732  ;;  %v1961_v12 = vrot.slane %v2338_v59, %v2689_v23 }
 0x2e5   : > { %v1734_v18 = vsel %vm686_vm3, %v1731_v15, %v1733_v17  ;;  %v1735_v19 = vsel %vm686_vm3, %v1733_v17, %v1731_v15 }
 0x2e6   : > { %v1845_v0 = vrot.slane %v2392_v16, 6  ;;  %v1748_v24 = vmul.f32 %v1741_v9, %v1735_v19  ;;  %v1749_v26 = vmul.f32 %v1745_v13, %v1734_v18 }
 0x2e7   : > { %v1790_v27 = vpop.permute.xlu0 %1789 }
 0x2e8   : > { %1847 = vst [vmem:[#allocation4 + $0x8] sm:$0xcc] %v1845_v0  ;;  %v2389_v29 = vpack.c.bf16 %v1749_v26, %v1748_v24  ;;  %v1792_v31 = vpop.permute.xlu1 %1791 }
 0x2e9   : > { %v1793_v32 = vsel %vm749_vm4, %v1790_v27, %v1792_v31  ;;  %v1794_v34 = vsel %vm749_vm4, %v1792_v31, %v1790_v27 }
 0x2ea   : > { %1758 = vst [vmem:[#allocation4] sm:$0x33] %v2389_v29  ;;  %v1807_v36 = vmul.f32 %v1800_v20, %v1794_v34  ;;  %v1808_v35 = vmul.f32 %v1804_v25, %v1793_v32  ;;  %v1975_v32 = vld [vmem:[%s3145_s7] sm:$0xf]  ;;  %v1387_v34 = vpop.f32.mrb[0].mxu1 }
 0x2eb   : > { %v1858_v40 = vpop.permute.xlu0 %1857 }
 0x2ec   : > { %v2391_v39 = vpack.c.bf16 %v1808_v35, %v1807_v36  ;;  %v1860_v42 = vpop.permute.xlu1 %1859  ;;  %v1981_v36 = vld [vmem:[%s3146_s8] sm:$0xff]  ;;  %v1389_v35 = vpop.f32.mrb[1].mxu1 }
 0x2ed   : > { %v1861_v43 = vsel %vm884_vm6, %v1858_v40, %v1860_v42  ;;  %v1862_v44 = vsel %vm884_vm6, %v1860_v42, %v1858_v40  ;;  %v2348_v40 = vld [vmem:[%s3148_s10 + $0x7] ss:$8 sm:$0x3]  ;;  %v2349_v42 = vld [vmem:[%s3148_s10 + $0x21] ss:$8 sm:$0x3] }
 0x2ee   : > { %1817 = vst [vmem:[#allocation4 + $0x8] sm:$0x33] %v2391_v39  ;;  %v1875_v45 = vmul.f32 %v1868_v37, %v1861_v43  ;;  %v1876_v47 = vmul.f32 %v1872_v38, %v1862_v44  ;;  %v1391_v37 = vpop.f32.mrb[2].mxu1  ;;  %v2075_v41 = vrot.slane %v2348_v40, %v2687_v22  ;;  %v2079_v39 = vrot.slane %v2348_v40, %v2689_v23 }
 0x2ef   : > { %v1917_v49 = vpop.permute.xlu0 %1916  ;;  %v1392_v38 = vpop.f32.mrb[3].mxu1  ;;  %v2097_v50 = vrot.slane %v2349_v42, %v2687_v22 }
 0x2f0   : > { %v2394_v63 = vpack.c.bf16 %v1876_v47, %v1875_v45  ;;  %v1919_v51 = vpop.permute.xlu1 %1918 }
 0x2f1   : > { %v1920_v52 = vsel %vm1010_vm7, %v1917_v49, %v1919_v51  ;;  %v1921_v53 = vsel %vm1010_vm7, %v1919_v51, %v1917_v49  ;;  %v2101_v49 = vrot.slane %v2349_v42, %v2689_v23 }
 0x2f2   : > { %v1884_v55 = vrot.slane %v2394_v63, 6  ;;  %v1934_v56 = vmul.f32 %v1927_v46, %v1920_v52  ;;  %v1935_v57 = vmul.f32 %v1931_v48, %v1921_v53 }
 0x2f3   : > { %v1888_v61 = vpop.permute.xlu0 %1887 }
 0x2f4   : > { %1886 = vst [vmem:[#allocation4 + $0x10] sm:$0xcc] %v1884_v55  ;;  %v2396_v60 = vpack.c.bf16 %v1935_v57, %v1934_v56  ;;  %v1890_v62 = vpop.permute.xlu1 %1889 }
 0x2f5   : > { %v1891_v1 = vsel %vm979_vm8, %v1888_v61, %v1890_v62  ;;  %v1892_v2 = vsel %vm979_vm8, %v1890_v62, %v1888_v61  ;;  %v2463_v4 = vld [vmem:[#allocation4] ss:$8 sps:$4 sm:$0xff]   ;;  %v2465_v5 = vld [vmem:[#allocation4 + $0x4] ss:$8 sps:$4 sm:$0xff]   ;;  %v2154_v61 = vld [vmem:[%s3147_s9] sm:$0xff] }
 0x2f6   : > { %v1943_v7 = vrot.slane %v2396_v60, 6  ;;  %v1905_v9 = vmul.f32 %v1898_v54, %v1891_v1  ;;  %v1906_v10 = vmul.f32 %v1902_v58, %v1892_v2  ;;  %2021 = vmatprep.subr.bf16.mxu0 %v2465_v5 }
 0x2f7   : > { %v1947_v11 = vpop.permute.xlu0 %1946  ;;  %2022 = vmatpush1.bf16.msra.mxu0 %v2463_v4 }
 0x2f8   : > { %1945 = vst [vmem:[#allocation4 + $0x18] sm:$0xcc] %v1943_v7  ;;  %v2395_v13 = vpack.c.bf16 %v1906_v10, %v1905_v9  ;;  %v1949_v14 = vpop.permute.xlu1 %1948 }
 0x2f9   : > { %v1950_v15 = vsel %vm1042_vm9, %v1947_v11, %v1949_v14  ;;  %v1951_v16 = vsel %vm1042_vm9, %v1949_v14, %v1947_v11 }
 0x2fa   : > { %1915 = vst [vmem:[#allocation4 + $0x18] sm:$0x33] %v2395_v13  ;;  %v1964_v17 = vmul.f32 %v1957_v3, %v1950_v15  ;;  %v1965_v18 = vmul.f32 %v1961_v12, %v1951_v16 }
 0x2fc   : > { %v2397_v19 = vpack.c.bf16 %v1965_v18, %v1964_v17 }
 0x2fe   : > { %1974 = vst [vmem:[#allocation4 + $0x20] sm:$0x33] %v2397_v19 }
 0x301   : > { %v2466_v20 = vld [vmem:[#allocation4 + $0x10] ss:$8 sps:$4 sm:$0xff]   ;;  %v2468_v0 = vld [vmem:[#allocation4 + $0x14] ss:$8 sps:$4 sm:$0xff]  }
 0x302   : > { %2023 = vmatprep.subr.bf16.mxu0 %v2468_v0 }
 0x303   : > { %2024 = vmatpush1.bf16.msra.mxu0 %v2466_v20 }
 0x305   : > { %v1980_v24 = vld [vmem:[#allocation4 + $0x20] sm:$0x33] }
 0x306   : > { %v2345_v26 = vcombine.high %v1980_v24, %v1980_v24  ;;  %v2344_v25 = vcombine.low %v1980_v24, %v1980_v24 }
 0x308   : > { %v408_v27 = vpop.permute.xlu0 %407  ;;  %2346 = vmatprep.subr.msk.bf16.mxu0 %vm434_vm0, %v2345_v26  ;;  %v2016_v28 = vsel %vm434_vm0, %v2344_v25, 0 }
 0x309   : > { %v486_v29 = vadd.f32 %v2928_v30, %v408_v27  ;;  %v488_v31 = vadd.f32 %v2930_v33, %v408_v27  ;;  %2026 = vmatpush1.bf16.msra.mxu0 %v2016_v28  ;;  %v1272_v30 = vld [vmem:[%s3142_s4] sm:$0xff] }
 0x30a   : > { %v392_v33 = vld [vmem:[%s3140_s2] sm:$0xff] }
 0x30b   : > { %2066 = vrot.lane.b32.xlu0 %v488_v31, %s2481_s28  ;;  %2064 = vrot.lane.b32.xlu1 %v486_v29, %s2481_s28 }
 0x30c   : > { %2347 = vmatmul.mubr.msk.bf16.vlgmr.msra.gmra.mrb[12].mxu0 %vm1679_vm10, %v1975_v32 }
 0x30f   : > { %2088 = vrot.lane.b32.xlu0 %v488_v31, %s2485_s13  ;;  %2086 = vrot.lane.b32.xlu1 %v486_v29, %s2485_s13 }
 0x313   : > { %1275 = vperm.xlu0 %2431, %v1272_v30   ;;  %397 = vperm.xlu1 %2432, %v392_v33  }
 0x317   : > { %1984 = vperm.xlu1 %2432, %v1981_v36  }
 0x37d   : > { %v2067_v43 = vpop.permute.xlu0 %2066  ;;  %v2065_v44 = vpop.permute.xlu1 %2064 }
 0x37e   : > { %v2068_v45 = vsel %vm717_vm5, %v2065_v44, %v2067_v43  ;;  %v2069_v47 = vsel %vm717_vm5, %v2067_v43, %v2065_v44 }
 0x37f   : > { %v2082_v46 = vmul.f32 %v2075_v41, %v2069_v47  ;;  %v2083_v48 = vmul.f32 %v2079_v39, %v2068_v45 }
 0x381   : > { %v2089_v63 = vpop.permute.xlu0 %2088  ;;  %v2087_v51 = vpop.permute.xlu1 %2086  ;;  %v2084_v54 = vadd.f32 %v2082_v46, %v486_v29  ;;  %v2085_v55 = vadd.f32 %v2083_v48, %v488_v31 }
 0x382   : > { %v2090_v52 = vsel %vm1010_vm7, %v2087_v51, %v2089_v63  ;;  %v2091_v53 = vsel %vm1010_vm7, %v2089_v63, %v2087_v51 }
 0x383   : > { %v2104_v56 = vmul.f32 %v2097_v50, %v2090_v52  ;;  %v2105_v57 = vmul.f32 %v2101_v49, %v2091_v53 }
 0x385   : > { %v2107_v58 = vadd.f32 %v2105_v57, %v2085_v55  ;;  %v2106_v59 = vadd.f32 %v2104_v56, %v2084_v54 }
 0x387   : > { %2110 = vrot.lane.b32.xlu1 %v2107_v58, %s2480_s27  ;;  %2108 = vrot.lane.b32.xlu0 %v2106_v59, %s2480_s27 }
 0x38b   : > { %2132 = vrot.lane.b32.xlu1 %v2107_v58, %s2484_s12  ;;  %2130 = vrot.lane.b32.xlu0 %v2106_v59, %s2484_s12 }
 0x38f   : > { %2157 = vperm.xlu0 %2431, %v2154_v61  }
 0x392   : > { %v1276_v60 = vpop.permute.xlu0 %1275  ;;  %v398_v62 = vpop.permute.xlu1 %397 }
 0x393   : > { %v1388_v1 = vadd.f32 %v1387_v34, %v1276_v60  ;;  %v476_v2 = vadd.f32 %v2592_v6, %v398_v62  ;;  %v478_v3 = vadd.f32 %v2594_v8, %v398_v62  ;;  %v1390_v4 = vadd.f32 %v1389_v35, %v1276_v60  ;;  %v2350_v6 = vld [vmem:[%s3148_s10 + $0x13] ss:$8 sm:$0x3]  ;;  %v2351_v8 = vld [vmem:[%s3148_s10 + $0x15] ss:$8 sm:$0x3] }
 0x394   : > { %v2119_v20 = vrot.slane %v2350_v6, %v2687_v22  ;;  %v2123_v0 = vrot.slane %v2350_v6, %v2689_v23  ;;  %v2141_v28 = vrot.slane %v2351_v8, %v2687_v22  ;;  %v2145_v29 = vrot.slane %v2351_v8, %v2689_v23 }
 0x395   : > { %v1394_v5 = vadd.f32 %v1388_v1, %v476_v2  ;;  %v1395_v7 = vadd.f32 %v1390_v4, %v478_v3 }
 0x396   : > { %v1985_v9 = vpop.permute.xlu1 %1984 }
 0x3df   : > { %v2055_v10 = vpop.f32.mrb[12].mxu0 }
 0x3e0   : > { %v2056_v12 = vadd.f32 %v2055_v10, %v1985_v9  ;;  %v2057_v11 = vpop.f32.mrb[13].mxu0 }
 0x3e1   : > { %v2058_v13 = vadd.f32 %v2057_v11, %v1985_v9  ;;  %v2059_v14 = vpop.f32.mrb[14].mxu0 }
 0x3e2   : > { %v2062_v15 = vadd.f32 %v2056_v12, %v1394_v5  ;;  %v2060_v16 = vpop.f32.mrb[15].mxu0 }
 0x3e3   : > { %v2063_v17 = vadd.f32 %v2058_v13, %v1395_v7 }
 0x3f9   : > { %v2109_v18 = vpop.permute.xlu0 %2108  ;;  %v2111_v19 = vpop.permute.xlu1 %2110 }
 0x3fa   : > { %v2112_v25 = vsel %vm843_vm2, %v2109_v18, %v2111_v19  ;;  %v2113_v27 = vsel %vm843_vm2, %v2111_v19, %v2109_v18 }
 0x3fb   : > { %v2126_v34 = vmul.f32 %v2119_v20, %v2113_v27  ;;  %v2127_v30 = vmul.f32 %v2123_v0, %v2112_v25 }
 0x3fd   : > { %v2131_v24 = vpop.permute.xlu0 %2130  ;;  %v2133_v26 = vpop.permute.xlu1 %2132  ;;  %v2128_v35 = vadd.f32 %v2126_v34, %v2106_v59  ;;  %v2129_v37 = vadd.f32 %v2127_v30, %v2107_v58 }
 0x3fe   : > { %v2134_v31 = vsel %vm884_vm6, %v2131_v24, %v2133_v26  ;;  %v2135_v32 = vsel %vm884_vm6, %v2133_v26, %v2131_v24 }
 0x3ff   : > { %v2148_v33 = vmul.f32 %v2141_v28, %v2134_v31  ;;  %v2149_v36 = vmul.f32 %v2145_v29, %v2135_v32 }
 0x401   : > { %v2150_v38 = vadd.f32 %v2148_v33, %v2128_v35  ;;  %v2151_v40 = vadd.f32 %v2149_v36, %v2129_v37 }
 0x403   : > { %v2152_v41 = vadd.f32 %v2150_v38, %v2062_v15  ;;  %v2153_v39 = vadd.f32 %v2151_v40, %v2063_v17 }
 0x40e   : > { %v2158_v22 = vpop.permute.xlu0 %2157 }
 0x40f   : > { %v2160_v23 = vadd.f32 %v2158_v22, %v2152_v41  ;;  %v2161_v42 = vadd.f32 %v2158_v22, %v2153_v39 }
 0x411   : > { %2162 = vst [vmem:[%s386_s21] sm:$0xff] %v2160_v23  ;;  %2163 = vst [vmem:[%s386_s21 + $0x8] sm:$0xff] %v2161_v42 }
 0x412 PF: > { %s21_s17 = sadd.s32 1, %s2477_s17  }
 0x413   : > { %p18_p4 = scmp.ge.s32.totalorder %s21_s17, 4  }
 0x415   :  { %20 = sbr.rel (!%p18_p4) target bundleno = 1 (0x1), region = 117 }

</bundles_post_ra>
